<compile_context>
chip_gen: v7x
topology: tpu7x:2x2x1
jax: 0.10.0
libtpu: 0.0.40
codegen_flags: <defaults>
</compile_context>

<pallas_src>
import functools
import jax
import jax.numpy as jnp
from jax import lax
from jax.experimental import pallas as pl
from jax.experimental.pallas import tpu as pltpu


def conv_stats_kernel(x_ref, w_ref, b_ref, y_ref, s_ref, ss_ref, *, H, W, Cin, Cout):
    """One (batch, frame) grid step: 3x3 conv as 9 bf16 MXU matmuls + bias,
    plus per-frame per-channel sum / sum-of-squares for GroupNorm.

    x_ref:  (H+2, W+2, Cin) f32   spatially pre-padded frame
    w_ref:  (3, 3, Cin, Cout) bf16 conv weight (size-1 frame tap squeezed)
    b_ref:  (1, Cout) f32          conv bias
    y_ref:  (H*W, Cout) f32        conv output for this frame
    s_ref:  (1, Cout) f32          per-frame channel sums
    ss_ref: (1, Cout) f32          per-frame channel sums of squares
    """
    # f32 accumulator; for toy/moderate H*W this stays in vregs. For production
    # H*W (e.g. 64x64) add an inner row-chunk loop so the accumulator stays
    # vreg-sized (see review note).
    acc = jnp.zeros((H * W, Cout), jnp.float32)
    for ky in range(3):
        for kx in range(3):
            patch = x_ref[ky:ky + H, kx:kx + W, :].reshape(H * W, Cin)
            # bf16 operands on the MXU, f32 accumulation.
            acc = acc + jnp.dot(patch.astype(jnp.bfloat16), w_ref[ky, kx],
                                preferred_element_type=jnp.float32)
    # TODO(synk): for small Cin (<128) a fused im2col (H*W, 9*Cin) x (9*Cin, Cout)
    # matmul would improve MXU utilization ~9x; kept as 9 K=Cin matmuls here
    # (equivalent MXU work once Cin >= 128) for lowering robustness.
    acc = acc + b_ref[...]
    y_ref[...] = acc
    # GroupNorm statistics from the f32 accumulator (before any downcast).
    s_ref[...] = jnp.sum(acc, axis=0, keepdims=True)
    ss_ref[...] = jnp.sum(acc * acc, axis=0, keepdims=True)


def affine_silu_kernel(y_ref, mul_ref, add_ref, o_ref):
    """One (batch, frame) grid step: fused GroupNorm affine (+ scale/shift) + SiLU.

    y_ref:   (H*W, Cout) f32  conv output for this frame
    mul_ref: (1, Cout)   f32  fused per-(sample, channel) multiplier
    add_ref: (1, Cout)   f32  fused per-(sample, channel) offset
    o_ref:   (H*W, Cout) f32  output
    """
    y = y_ref[...] * mul_ref[...] + add_ref[...]
    o_ref[...] = (y * jax.nn.sigmoid(y)).astype(o_ref.dtype)   # SiLU


def block_forward(x_ncdhw, w, bias, gamma, beta, groups, scale_shift=None, eps=1e-5):
    """PyTorch-semantics Block forward. x_ncdhw: (B, C_in, F, H, W) float32."""
    B, Cin, F, H, W = x_ncdhw.shape
    Cout = w.shape[-1]
    assert Cout % groups == 0
    Cg = Cout // groups

    # NCDHW -> NDHWC, zero-pad the two spatial dims by 1 (Conv3d padding=(0,1,1)).
    # TODO(synk): fold the pad into the kernel (halo handling) to save one HBM
    # round trip of the activation; kept in the wrapper for lowering robustness.
    xc = jnp.transpose(x_ncdhw, (0, 2, 3, 4, 1)).astype(jnp.float32)
    x_pad = jnp.pad(xc, ((0, 0), (0, 0), (1, 1), (1, 1), (0, 0)))

    w_bf16 = w.astype(jnp.bfloat16)                         # MXU operands in bf16
    bias2d = bias.reshape(1, Cout).astype(jnp.float32)

    # Per-grid-step VMEM footprint (double-buffered by the pipeliner) -> explicit
    # scoped-VMEM budget with headroom; matters on v7x (64 MiB physical, 32 default).
    step_bytes = ((H + 2) * (W + 2) * Cin * 4 + 9 * Cin * Cout * 2
                  + H * W * Cout * 4 + 6 * Cout * 4)
    vmem_limit = int(min(max(6 * step_bytes, 16 * 2**20), 48 * 2**20))

    # ---- pass 1: conv + per-(b, f) channel statistics, tiled over (B, F) ------
    conv_kernel = functools.partial(conv_stats_kernel, H=H, W=W, Cin=Cin, Cout=Cout)
    y_conv, fsum, fsq = pl.pallas_call(
        conv_kernel,
        out_shape=(
            jax.ShapeDtypeStruct((B, F, H * W, Cout), jnp.float32),
            jax.ShapeDtypeStruct((B, F, 1, Cout), jnp.float32),
            jax.ShapeDtypeStruct((B, F, 1, Cout), jnp.float32),
        ),
        grid_spec=pltpu.PrefetchScalarGridSpec(
            num_scalar_prefetch=0,
            grid=(B, F),
            in_specs=[
                pl.BlockSpec((None, None, H + 2, W + 2, Cin),
                             lambda b, f: (b, f, 0, 0, 0)),
                pl.BlockSpec((3, 3, Cin, Cout), lambda b, f: (0, 0, 0, 0)),
                pl.BlockSpec((1, Cout), lambda b, f: (0, 0)),
            ],
            out_specs=(
                pl.BlockSpec((None, None, H * W, Cout), lambda b, f: (b, f, 0, 0)),
                pl.BlockSpec((None, None, 1, Cout), lambda b, f: (b, f, 0, 0)),
                pl.BlockSpec((None, None, 1, Cout), lambda b, f: (b, f, 0, 0)),
            ),
        ),
        compiler_params=pltpu.CompilerParams(
            dimension_semantics=("parallel", "parallel"),
            vmem_limit_bytes=vmem_limit),
    )(x_pad, w_bf16, bias2d)

    # ---- GroupNorm stats + fused per-(sample, channel) affine (tiny, in XLA) ---
    # NOTE: var = E[x^2] - E[x]^2 in f32; fine for normalized-scale activations.
    sum_c = fsum[:, :, 0, :].sum(axis=1)                    # (B, Cout)
    sumsq_c = fsq[:, :, 0, :].sum(axis=1)                   # (B, Cout)
    n = jnp.float32(F * H * W * Cg)
    gsum = sum_c.reshape(B, groups, Cg).sum(axis=-1, keepdims=True)
    gsq = sumsq_c.reshape(B, groups, Cg).sum(axis=-1, keepdims=True)
    mean_g = gsum / n
    var_g = gsq / n - mean_g * mean_g                       # biased var (PyTorch GN)
    inv_g = lax.rsqrt(var_g + eps)
    mean = jnp.broadcast_to(mean_g, (B, groups, Cg)).reshape(B, Cout)
    inv = jnp.broadcast_to(inv_g, (B, groups, Cg)).reshape(B, Cout)

    if scale_shift is None:
        scale2d = jnp.zeros((B, Cout), jnp.float32)
        shift2d = jnp.zeros((B, Cout), jnp.float32)
    else:
        scale, shift = scale_shift
        scale2d = scale.reshape(B, Cout).astype(jnp.float32)
        shift2d = shift.reshape(B, Cout).astype(jnp.float32)

    g1 = gamma.reshape(1, Cout).astype(jnp.float32)
    b1 = beta.reshape(1, Cout).astype(jnp.float32)
    mul = (g1 * inv) * (scale2d + 1.0)                          # (B, Cout)
    add = (b1 - g1 * inv * mean) * (scale2d + 1.0) + shift2d    # (B, Cout)
    mul3 = mul.reshape(B, 1, Cout)
    add3 = add.reshape(B, 1, Cout)

    # ---- pass 2: apply fused affine + SiLU, tiled over (B, F) -----------------
    out = pl.pallas_call(
        affine_silu_kernel,
        out_shape=jax.ShapeDtypeStruct((B, F, H * W, Cout), jnp.float32),
        grid_spec=pltpu.PrefetchScalarGridSpec(
            num_scalar_prefetch=0,
            grid=(B, F),
            in_specs=[
                pl.BlockSpec((None, None, H * W, Cout), lambda b, f: (b, f, 0, 0)),
                pl.BlockSpec((None, 1, Cout), lambda b, f: (b, 0, 0)),
                pl.BlockSpec((None, 1, Cout), lambda b, f: (b, 0, 0)),
            ],
            out_specs=pl.BlockSpec((None, None, H * W, Cout),
                                   lambda b, f: (b, f, 0, 0)),
        ),
        compiler_params=pltpu.CompilerParams(
            dimension_semantics=("parallel", "parallel"),
            vmem_limit_bytes=vmem_limit),
    )(y_conv, mul3, add3)

    out = out.reshape(B, F, H, W, Cout)
    return jnp.transpose(out, (0, 4, 1, 2, 3))              # back to (B, Cout, F, H, W)


def ref_block(x_ncdhw, w, bias, gamma, beta, groups, scale_shift=None, eps=1e-5,
              conv_in_dtype=jnp.float32):
    """Pure-JAX reference matching the PyTorch module. conv_in_dtype lets the
    test mirror the kernel's bf16 MXU operands (accumulation stays f32)."""
    B, Cin, F, H, W = x_ncdhw.shape
    Cout = w.shape[-1]
    x = jnp.transpose(x_ncdhw, (0, 2, 3, 4, 1)).reshape(B * F, H, W, Cin)
    y = lax.conv_general_dilated(
        x.astype(conv_in_dtype), w.astype(conv_in_dtype), (1, 1), 'SAME',
        dimension_numbers=('NHWC', 'HWIO', 'NHWC'),
        preferred_element_type=jnp.float32)
    y = y + bias.reshape(1, 1, 1, Cout)
    y = y.reshape(B, F, H, W, Cout)
    y = jnp.transpose(y, (0, 4, 1, 2, 3))                   # (B, Cout, F, H, W)
    yg = y.reshape(B, groups, Cout // groups, F, H, W)
    mean = yg.mean(axis=(2, 3, 4, 5), keepdims=True)
    var = yg.var(axis=(2, 3, 4, 5), keepdims=True)
    yn = ((yg - mean) / jnp.sqrt(var + eps)).reshape(B, Cout, F, H, W)
    yn = yn * gamma.reshape(1, Cout, 1, 1, 1) + beta.reshape(1, Cout, 1, 1, 1)
    if scale_shift is not None:
        scale, shift = scale_shift
        yn = yn * (scale + 1) + shift
    return yn * jax.nn.sigmoid(yn)


if __name__ == "__main__":
    B, Cin, Cout, F, H, W, groups = 2, 4, 8, 3, 16, 16, 8

    key = jax.random.PRNGKey(0)
    ks = jax.random.split(key, 7)
    # PyTorch weight is (Cout, Cin, 1, 3, 3); stored here directly in HWIO
    # (3, 3, Cin, Cout) for the channels-last kernel.
    x = jax.random.normal(ks[0], (B, Cin, F, H, W), jnp.float32)   # NCDHW, like PyTorch
    w = 0.2 * jax.random.normal(ks[1], (3, 3, Cin, Cout), jnp.float32)
    bias = 0.1 * jax.random.normal(ks[2], (Cout,), jnp.float32)
    gamma = 1.0 + 0.1 * jax.random.normal(ks[3], (Cout,), jnp.float32)
    beta = 0.1 * jax.random.normal(ks[4], (Cout,), jnp.float32)
    scale = 0.1 * jax.random.normal(ks[5], (B, Cout, 1, 1, 1), jnp.float32)
    shift = 0.1 * jax.random.normal(ks[6], (B, Cout, 1, 1, 1), jnp.float32)

    out = block_forward(x, w, bias, gamma, beta, groups, scale_shift=(scale, shift))
    out = jax.block_until_ready(out)
    assert out.shape == (B, Cout, F, H, W)

    # Tight check vs a reference using the same bf16 conv operands (f32 accum).
    ref_bf = ref_block(x, w, bias, gamma, beta, groups, scale_shift=(scale, shift),
                       conv_in_dtype=jnp.bfloat16)
    err_bf = float(jnp.max(jnp.abs(out - ref_bf)))
    assert jnp.allclose(out, ref_bf, atol=2e-3, rtol=2e-3), f"max abs err {err_bf}"

    # Looser sanity check vs the full-f32 reference (bf16 MXU rounding only).
    ref_f32 = ref_block(x, w, bias, gamma, beta, groups, scale_shift=(scale, shift),
                        conv_in_dtype=jnp.float32)
    err_f32 = float(jnp.max(jnp.abs(out - ref_f32)))
    assert err_f32 < 5e-2, f"max abs err vs f32 ref {err_f32}"

    print("KERNEL_OK")
</pallas_src>

<mosaic_0001>
module attributes {stable_mosaic.version = 11 : i64} {
  func.func @conv_stats_kernel(%arg0: i32, %arg1: i32, %arg2: memref<1x1x18x18x4xf32, #tpu.memory_space<vmem>>, %arg3: memref<3x3x4x8xbf16, #tpu.memory_space<vmem>>, %arg4: memref<1x8xf32, #tpu.memory_space<vmem>>, %arg5: memref<1x1x256x8xf32, #tpu.memory_space<vmem>>, %arg6: memref<1x1x1x8xf32, #tpu.memory_space<vmem>>, %arg7: memref<1x1x1x8xf32, #tpu.memory_space<vmem>>) attributes {dimension_semantics = [#tpu.dimension_semantics<parallel>, #tpu.dimension_semantics<parallel>], iteration_bounds = array<i64: 2, 3>, scalar_prefetch = 0 : i64, scratch_operands = 0 : i64, tpu.core_type = #tpu.core_type<tc>, window_params = [{transform_indices = @transform_0, window_bounds = array<i64: 1, 1, 18, 18, 4>}, {pipeline_mode = #tpu.pipeline_mode<synchronous>, transform_indices = @transform_1, window_bounds = array<i64: 3, 3, 4, 8>}, {pipeline_mode = #tpu.pipeline_mode<synchronous>, transform_indices = @transform_2, window_bounds = array<i64: 1, 8>}, {transform_indices = @transform_3, window_bounds = array<i64: 1, 1, 256, 8>}, {transform_indices = @transform_4, window_bounds = array<i64: 1, 1, 1, 8>}, {transform_indices = @transform_5, window_bounds = array<i64: 1, 1, 1, 8>}]} {
    %cst = arith.constant 0.000000e+00 : f32
    %0 = vector.broadcast %cst : f32 to vector<256x8xf32>
    %c0 = arith.constant 0 : index
    %c0_0 = arith.constant 0 : index
    %c0_1 = arith.constant 0 : index
    %c0_2 = arith.constant 0 : index
    %c0_3 = arith.constant 0 : index
    %1 = vector.load %arg2[%c0, %c0_0, %c0_1, %c0_2, %c0_3] : memref<1x1x18x18x4xf32, #tpu.memory_space<vmem>>, vector<1x1x16x16x4xf32>
    %2 = vector.shape_cast %1 : vector<1x1x16x16x4xf32> to vector<16x16x4xf32>
    %3 = vector.shape_cast %2 : vector<16x16x4xf32> to vector<256x4xf32>
    %4 = arith.truncf %3 : vector<256x4xf32> to vector<256x4xbf16>
    %c0_4 = arith.constant 0 : index
    %c0_5 = arith.constant 0 : index
    %c0_6 = arith.constant 0 : index
    %c0_7 = arith.constant 0 : index
    %5 = vector.load %arg3[%c0_4, %c0_5, %c0_6, %c0_7] : memref<3x3x4x8xbf16, #tpu.memory_space<vmem>>, vector<1x1x4x8xbf16>
    %6 = vector.shape_cast %5 : vector<1x1x4x8xbf16> to vector<4x8xbf16>
    %cst_8 = arith.constant dense<0.000000e+00> : vector<256x8xf32>
    %7 = tpu.matmul %4, %6, %cst_8 {dimension_numbers = #tpu.dot_dimension_numbers<[1], [0], [0], [1], [0, 0, 1, 1], [], []>} : vector<256x4xbf16>, vector<4x8xbf16>, vector<256x8xf32> -> vector<256x8xf32>
    %8 = arith.addf %0, %7 : vector<256x8xf32>
    %c0_9 = arith.constant 0 : index
    %c0_10 = arith.constant 0 : index
    %c0_11 = arith.constant 0 : index
    %c1 = arith.constant 1 : index
    %c0_12 = arith.constant 0 : index
    %9 = vector.load %arg2[%c0_9, %c0_10, %c0_11, %c1, %c0_12] : memref<1x1x18x18x4xf32, #tpu.memory_space<vmem>>, vector<1x1x16x16x4xf32>
    %10 = vector.shape_cast %9 : vector<1x1x16x16x4xf32> to vector<16x16x4xf32>
    %11 = vector.shape_cast %10 : vector<16x16x4xf32> to vector<256x4xf32>
    %12 = arith.truncf %11 : vector<256x4xf32> to vector<256x4xbf16>
    %c0_13 = arith.constant 0 : index
    %c1_14 = arith.constant 1 : index
    %c0_15 = arith.constant 0 : index
    %c0_16 = arith.constant 0 : index
    %13 = vector.load %arg3[%c0_13, %c1_14, %c0_15, %c0_16] : memref<3x3x4x8xbf16, #tpu.memory_space<vmem>>, vector<1x1x4x8xbf16>
    %14 = vector.shape_cast %13 : vector<1x1x4x8xbf16> to vector<4x8xbf16>
    %cst_17 = arith.constant dense<0.000000e+00> : vector<256x8xf32>
    %15 = tpu.matmul %12, %14, %cst_17 {dimension_numbers = #tpu.dot_dimension_numbers<[1], [0], [0], [1], [0, 0, 1, 1], [], []>} : vector<256x4xbf16>, vector<4x8xbf16>, vector<256x8xf32> -> vector<256x8xf32>
    %16 = arith.addf %8, %15 : vector<256x8xf32>
    %c0_18 = arith.constant 0 : index
    %c0_19 = arith.constant 0 : index
    %c0_20 = arith.constant 0 : index
    %c2 = arith.constant 2 : index
    %c0_21 = arith.constant 0 : index
    %17 = vector.load %arg2[%c0_18, %c0_19, %c0_20, %c2, %c0_21] : memref<1x1x18x18x4xf32, #tpu.memory_space<vmem>>, vector<1x1x16x16x4xf32>
    %18 = vector.shape_cast %17 : vector<1x1x16x16x4xf32> to vector<16x16x4xf32>
    %19 = vector.shape_cast %18 : vector<16x16x4xf32> to vector<256x4xf32>
    %20 = arith.truncf %19 : vector<256x4xf32> to vector<256x4xbf16>
    %c0_22 = arith.constant 0 : index
    %c2_23 = arith.constant 2 : index
    %c0_24 = arith.constant 0 : index
    %c0_25 = arith.constant 0 : index
    %21 = vector.load %arg3[%c0_22, %c2_23, %c0_24, %c0_25] : memref<3x3x4x8xbf16, #tpu.memory_space<vmem>>, vector<1x1x4x8xbf16>
    %22 = vector.shape_cast %21 : vector<1x1x4x8xbf16> to vector<4x8xbf16>
    %cst_26 = arith.constant dense<0.000000e+00> : vector<256x8xf32>
    %23 = tpu.matmul %20, %22, %cst_26 {dimension_numbers = #tpu.dot_dimension_numbers<[1], [0], [0], [1], [0, 0, 1, 1], [], []>} : vector<256x4xbf16>, vector<4x8xbf16>, vector<256x8xf32> -> vector<256x8xf32>
    %24 = arith.addf %16, %23 : vector<256x8xf32>
    %c0_27 = arith.constant 0 : index
    %c0_28 = arith.constant 0 : index
    %c1_29 = arith.constant 1 : index
    %c0_30 = arith.constant 0 : index
    %c0_31 = arith.constant 0 : index
    %25 = vector.load %arg2[%c0_27, %c0_28, %c1_29, %c0_30, %c0_31] : memref<1x1x18x18x4xf32, #tpu.memory_space<vmem>>, vector<1x1x16x16x4xf32>
    %26 = vector.shape_cast %25 : vector<1x1x16x16x4xf32> to vector<16x16x4xf32>
    %27 = vector.shape_cast %26 : vector<16x16x4xf32> to vector<256x4xf32>
    %28 = arith.truncf %27 : vector<256x4xf32> to vector<256x4xbf16>
    %c1_32 = arith.constant 1 : index
    %c0_33 = arith.constant 0 : index
    %c0_34 = arith.constant 0 : index
    %c0_35 = arith.constant 0 : index
    %29 = vector.load %arg3[%c1_32, %c0_33, %c0_34, %c0_35] : memref<3x3x4x8xbf16, #tpu.memory_space<vmem>>, vector<1x1x4x8xbf16>
    %30 = vector.shape_cast %29 : vector<1x1x4x8xbf16> to vector<4x8xbf16>
    %cst_36 = arith.constant dense<0.000000e+00> : vector<256x8xf32>
    %31 = tpu.matmul %28, %30, %cst_36 {dimension_numbers = #tpu.dot_dimension_numbers<[1], [0], [0], [1], [0, 0, 1, 1], [], []>} : vector<256x4xbf16>, vector<4x8xbf16>, vector<256x8xf32> -> vector<256x8xf32>
    %32 = arith.addf %24, %31 : vector<256x8xf32>
    %c0_37 = arith.constant 0 : index
    %c0_38 = arith.constant 0 : index
    %c1_39 = arith.constant 1 : index
    %c1_40 = arith.constant 1 : index
    %c0_41 = arith.constant 0 : index
    %33 = vector.load %arg2[%c0_37, %c0_38, %c1_39, %c1_40, %c0_41] : memref<1x1x18x18x4xf32, #tpu.memory_space<vmem>>, vector<1x1x16x16x4xf32>
    %34 = vector.shape_cast %33 : vector<1x1x16x16x4xf32> to vector<16x16x4xf32>
    %35 = vector.shape_cast %34 : vector<16x16x4xf32> to vector<256x4xf32>
    %36 = arith.truncf %35 : vector<256x4xf32> to vector<256x4xbf16>
    %c1_42 = arith.constant 1 : index
    %c1_43 = arith.constant 1 : index
    %c0_44 = arith.constant 0 : index
    %c0_45 = arith.constant 0 : index
    %37 = vector.load %arg3[%c1_42, %c1_43, %c0_44, %c0_45] : memref<3x3x4x8xbf16, #tpu.memory_space<vmem>>, vector<1x1x4x8xbf16>
    %38 = vector.shape_cast %37 : vector<1x1x4x8xbf16> to vector<4x8xbf16>
    %cst_46 = arith.constant dense<0.000000e+00> : vector<256x8xf32>
    %39 = tpu.matmul %36, %38, %cst_46 {dimension_numbers = #tpu.dot_dimension_numbers<[1], [0], [0], [1], [0, 0, 1, 1], [], []>} : vector<256x4xbf16>, vector<4x8xbf16>, vector<256x8xf32> -> vector<256x8xf32>
    %40 = arith.addf %32, %39 : vector<256x8xf32>
    %c0_47 = arith.constant 0 : index
    %c0_48 = arith.constant 0 : index
    %c1_49 = arith.constant 1 : index
    %c2_50 = arith.constant 2 : index
    %c0_51 = arith.constant 0 : index
    %41 = vector.load %arg2[%c0_47, %c0_48, %c1_49, %c2_50, %c0_51] : memref<1x1x18x18x4xf32, #tpu.memory_space<vmem>>, vector<1x1x16x16x4xf32>
    %42 = vector.shape_cast %41 : vector<1x1x16x16x4xf32> to vector<16x16x4xf32>
    %43 = vector.shape_cast %42 : vector<16x16x4xf32> to vector<256x4xf32>
    %44 = arith.truncf %43 : vector<256x4xf32> to vector<256x4xbf16>
    %c1_52 = arith.constant 1 : index
    %c2_53 = arith.constant 2 : index
    %c0_54 = arith.constant 0 : index
    %c0_55 = arith.constant 0 : index
    %45 = vector.load %arg3[%c1_52, %c2_53, %c0_54, %c0_55] : memref<3x3x4x8xbf16, #tpu.memory_space<vmem>>, vector<1x1x4x8xbf16>
    %46 = vector.shape_cast %45 : vector<1x1x4x8xbf16> to vector<4x8xbf16>
    %cst_56 = arith.constant dense<0.000000e+00> : vector<256x8xf32>
    %47 = tpu.matmul %44, %46, %cst_56 {dimension_numbers = #tpu.dot_dimension_numbers<[1], [0], [0], [1], [0, 0, 1, 1], [], []>} : vector<256x4xbf16>, vector<4x8xbf16>, vector<256x8xf32> -> vector<256x8xf32>
    %48 = arith.addf %40, %47 : vector<256x8xf32>
    %c0_57 = arith.constant 0 : index
    %c0_58 = arith.constant 0 : index
    %c2_59 = arith.constant 2 : index
    %c0_60 = arith.constant 0 : index
    %c0_61 = arith.constant 0 : index
    %49 = vector.load %arg2[%c0_57, %c0_58, %c2_59, %c0_60, %c0_61] : memref<1x1x18x18x4xf32, #tpu.memory_space<vmem>>, vector<1x1x16x16x4xf32>
    %50 = vector.shape_cast %49 : vector<1x1x16x16x4xf32> to vector<16x16x4xf32>
    %51 = vector.shape_cast %50 : vector<16x16x4xf32> to vector<256x4xf32>
    %52 = arith.truncf %51 : vector<256x4xf32> to vector<256x4xbf16>
    %c2_62 = arith.constant 2 : index
    %c0_63 = arith.constant 0 : index
    %c0_64 = arith.constant 0 : index
    %c0_65 = arith.constant 0 : index
    %53 = vector.load %arg3[%c2_62, %c0_63, %c0_64, %c0_65] : memref<3x3x4x8xbf16, #tpu.memory_space<vmem>>, vector<1x1x4x8xbf16>
    %54 = vector.shape_cast %53 : vector<1x1x4x8xbf16> to vector<4x8xbf16>
    %cst_66 = arith.constant dense<0.000000e+00> : vector<256x8xf32>
    %55 = tpu.matmul %52, %54, %cst_66 {dimension_numbers = #tpu.dot_dimension_numbers<[1], [0], [0], [1], [0, 0, 1, 1], [], []>} : vector<256x4xbf16>, vector<4x8xbf16>, vector<256x8xf32> -> vector<256x8xf32>
    %56 = arith.addf %48, %55 : vector<256x8xf32>
    %c0_67 = arith.constant 0 : index
    %c0_68 = arith.constant 0 : index
    %c2_69 = arith.constant 2 : index
    %c1_70 = arith.constant 1 : index
    %c0_71 = arith.constant 0 : index
    %57 = vector.load %arg2[%c0_67, %c0_68, %c2_69, %c1_70, %c0_71] : memref<1x1x18x18x4xf32, #tpu.memory_space<vmem>>, vector<1x1x16x16x4xf32>
    %58 = vector.shape_cast %57 : vector<1x1x16x16x4xf32> to vector<16x16x4xf32>
    %59 = vector.shape_cast %58 : vector<16x16x4xf32> to vector<256x4xf32>
    %60 = arith.truncf %59 : vector<256x4xf32> to vector<256x4xbf16>
    %c2_72 = arith.constant 2 : index
    %c1_73 = arith.constant 1 : index
    %c0_74 = arith.constant 0 : index
    %c0_75 = arith.constant 0 : index
    %61 = vector.load %arg3[%c2_72, %c1_73, %c0_74, %c0_75] : memref<3x3x4x8xbf16, #tpu.memory_space<vmem>>, vector<1x1x4x8xbf16>
    %62 = vector.shape_cast %61 : vector<1x1x4x8xbf16> to vector<4x8xbf16>
    %cst_76 = arith.constant dense<0.000000e+00> : vector<256x8xf32>
    %63 = tpu.matmul %60, %62, %cst_76 {dimension_numbers = #tpu.dot_dimension_numbers<[1], [0], [0], [1], [0, 0, 1, 1], [], []>} : vector<256x4xbf16>, vector<4x8xbf16>, vector<256x8xf32> -> vector<256x8xf32>
    %64 = arith.addf %56, %63 : vector<256x8xf32>
    %c0_77 = arith.constant 0 : index
    %c0_78 = arith.constant 0 : index
    %c2_79 = arith.constant 2 : index
    %c2_80 = arith.constant 2 : index
    %c0_81 = arith.constant 0 : index
    %65 = vector.load %arg2[%c0_77, %c0_78, %c2_79, %c2_80, %c0_81] : memref<1x1x18x18x4xf32, #tpu.memory_space<vmem>>, vector<1x1x16x16x4xf32>
    %66 = vector.shape_cast %65 : vector<1x1x16x16x4xf32> to vector<16x16x4xf32>
    %67 = vector.shape_cast %66 : vector<16x16x4xf32> to vector<256x4xf32>
    %68 = arith.truncf %67 : vector<256x4xf32> to vector<256x4xbf16>
    %c2_82 = arith.constant 2 : index
    %c2_83 = arith.constant 2 : index
    %c0_84 = arith.constant 0 : index
    %c0_85 = arith.constant 0 : index
    %69 = vector.load %arg3[%c2_82, %c2_83, %c0_84, %c0_85] : memref<3x3x4x8xbf16, #tpu.memory_space<vmem>>, vector<1x1x4x8xbf16>
    %70 = vector.shape_cast %69 : vector<1x1x4x8xbf16> to vector<4x8xbf16>
    %cst_86 = arith.constant dense<0.000000e+00> : vector<256x8xf32>
    %71 = tpu.matmul %68, %70, %cst_86 {dimension_numbers = #tpu.dot_dimension_numbers<[1], [0], [0], [1], [0, 0, 1, 1], [], []>} : vector<256x4xbf16>, vector<4x8xbf16>, vector<256x8xf32> -> vector<256x8xf32>
    %72 = arith.addf %64, %71 : vector<256x8xf32>
    %c0_87 = arith.constant 0 : index
    %c0_88 = arith.constant 0 : index
    %73 = vector.load %arg4[%c0_87, %c0_88] : memref<1x8xf32, #tpu.memory_space<vmem>>, vector<1x8xf32>
    %74 = vector.broadcast %73 : vector<1x8xf32> to vector<256x8xf32>
    %75 = arith.addf %72, %74 : vector<256x8xf32>
    %c0_89 = arith.constant 0 : index
    %c0_90 = arith.constant 0 : index
    %c0_91 = arith.constant 0 : index
    %c0_92 = arith.constant 0 : index
    %76 = vector.load %arg5[%c0_89, %c0_90, %c0_91, %c0_92] : memref<1x1x256x8xf32, #tpu.memory_space<vmem>>, vector<1x1x256x8xf32>
    %77 = vector.shape_cast %76 : vector<1x1x256x8xf32> to vector<256x8xf32>
    %78 = vector.shape_cast %75 : vector<256x8xf32> to vector<1x1x256x8xf32>
    tpu.vector_store %arg5[%c0_89, %c0_90, %c0_91, %c0_92], %78 {strides = array<i32>} : memref<1x1x256x8xf32, #tpu.memory_space<vmem>>, vector<1x1x256x8xf32>,
    %cst_93 = arith.constant dense<0.000000e+00> : vector<8xf32>
    %79 = vector.multi_reduction <add>, %75, %cst_93 [0] : vector<256x8xf32> to vector<8xf32>
    %80 = vector.shape_cast %79 : vector<8xf32> to vector<1x8xf32>
    %c0_94 = arith.constant 0 : index
    %c0_95 = arith.constant 0 : index
    %c0_96 = arith.constant 0 : index
    %c0_97 = arith.constant 0 : index
    %81 = vector.load %arg6[%c0_94, %c0_95, %c0_96, %c0_97] : memref<1x1x1x8xf32, #tpu.memory_space<vmem>>, vector<1x1x1x8xf32>
    %82 = vector.shape_cast %81 : vector<1x1x1x8xf32> to vector<1x8xf32>
    %83 = vector.shape_cast %80 : vector<1x8xf32> to vector<1x1x1x8xf32>
    tpu.vector_store %arg6[%c0_94, %c0_95, %c0_96, %c0_97], %83 {strides = array<i32>} : memref<1x1x1x8xf32, #tpu.memory_space<vmem>>, vector<1x1x1x8xf32>,
    %84 = arith.mulf %75, %75 : vector<256x8xf32>
    %cst_98 = arith.constant dense<0.000000e+00> : vector<8xf32>
    %85 = vector.multi_reduction <add>, %84, %cst_98 [0] : vector<256x8xf32> to vector<8xf32>
    %86 = vector.shape_cast %85 : vector<8xf32> to vector<1x8xf32>
    %c0_99 = arith.constant 0 : index
    %c0_100 = arith.constant 0 : index
    %c0_101 = arith.constant 0 : index
    %c0_102 = arith.constant 0 : index
    %87 = vector.load %arg7[%c0_99, %c0_100, %c0_101, %c0_102] : memref<1x1x1x8xf32, #tpu.memory_space<vmem>>, vector<1x1x1x8xf32>
    %88 = vector.shape_cast %87 : vector<1x1x1x8xf32> to vector<1x8xf32>
    %89 = vector.shape_cast %86 : vector<1x8xf32> to vector<1x1x1x8xf32>
    tpu.vector_store %arg7[%c0_99, %c0_100, %c0_101, %c0_102], %89 {strides = array<i32>} : memref<1x1x1x8xf32, #tpu.memory_space<vmem>>, vector<1x1x1x8xf32>,
    return
  }
  func.func @transform_0(%arg0: i32, %arg1: i32) -> (i32, i32, i32, i32, i32) {
    %c0_i32 = arith.constant 0 : i32
    %c0_i32_0 = arith.constant 0 : i32
    %c0_i32_1 = arith.constant 0 : i32
    %c0_i32_2 = arith.constant 0 : i32
    return %arg0, %arg1, %c0_i32, %c0_i32_0, %c0_i32_1 : i32, i32, i32, i32, i32
  }
  func.func @transform_1(%arg0: i32, %arg1: i32) -> (i32, i32, i32, i32) {
    %c0_i32 = arith.constant 0 : i32
    %c0_i32_0 = arith.constant 0 : i32
    %c0_i32_1 = arith.constant 0 : i32
    %c0_i32_2 = arith.constant 0 : i32
    %c0_i32_3 = arith.constant 0 : i32
    return %c0_i32, %c0_i32_0, %c0_i32_1, %c0_i32_2 : i32, i32, i32, i32
  }
  func.func @transform_2(%arg0: i32, %arg1: i32) -> (i32, i32) {
    %c0_i32 = arith.constant 0 : i32
    %c0_i32_0 = arith.constant 0 : i32
    %c0_i32_1 = arith.constant 0 : i32
    return %c0_i32, %c0_i32_0 : i32, i32
  }
  func.func @transform_3(%arg0: i32, %arg1: i32) -> (i32, i32, i32, i32) {
    %c0_i32 = arith.constant 0 : i32
    %c0_i32_0 = arith.constant 0 : i32
    %c0_i32_1 = arith.constant 0 : i32
    return %arg0, %arg1, %c0_i32, %c0_i32_0 : i32, i32, i32, i32
  }
  func.func @transform_4(%arg0: i32, %arg1: i32) -> (i32, i32, i32, i32) {
    %c0_i32 = arith.constant 0 : i32
    %c0_i32_0 = arith.constant 0 : i32
    %c0_i32_1 = arith.constant 0 : i32
    return %arg0, %arg1, %c0_i32, %c0_i32_0 : i32, i32, i32, i32
  }
  func.func @transform_5(%arg0: i32, %arg1: i32) -> (i32, i32, i32, i32) {
    %c0_i32 = arith.constant 0 : i32
    %c0_i32_0 = arith.constant 0 : i32
    %c0_i32_1 = arith.constant 0 : i32
    return %arg0, %arg1, %c0_i32, %c0_i32_0 : i32, i32, i32, i32
  }
}

</mosaic_0001>

<bundles_post_ra>
// kernel: tpu_custom_call.1
= control target key start
LH: loop header
LB: loop body
LE: loop exit
PB: predicated region body
PF: predicated region fallthrough
CT: control target
= control target key end

     0   :  { %11 = vsyncpa [#allocation3], 0  ;;  %s5560_s0 = inlined_call_operand.vmem [shape: f32[2,3,18,18,4], index: 0, kind: input, shape index: {}]   ;;  %s5561_s1 = inlined_call_operand.vmem [shape: bf16[3,3,4,8], index: 1, kind: input, shape index: {}]   ;;  %s5562_s2 = inlined_call_operand.vmem [shape: f32[1,8], index: 2, kind: input, shape index: {}]   ;;  %s5563_s3 = inlined_call_operand.vmem [shape: f32[2,3,256,8], index: 3, kind: output, shape index: {0}]   ;;  %s5564_s4 = inlined_call_operand.hbm [shape: f32[2,3,1,8], index: 4, kind: output, shape index: {1}]   ;;  %s5565_s5 = inlined_call_operand.hbm [shape: f32[2,3,1,8], index: 5, kind: output, shape index: {2}]  }
   0x1   :  { %13 = vsyncpa [#allocation3 + $0x1], 0 }
   0x2   :  { %14 = vsyncpa [#allocation5], 0 }
   0x3   :  { %16 = vsyncpa [#allocation5 + $0x1], 0  ;;  %s4634_s18 = smov 0   ;;  %s4636_s19 = smov 0  }
   0x4   :  { %s4638_s20 = smov 0   ;;  %s4640_s21 = smov 0  }
   0x5   :  { %s4642_s22 = smov 0   ;;  %s4644_s23 = smov 0  }
   0x6   :  { %s4646_s24 = smov 0   ;;  %s4648_s25 = smov 0  }
   0x7 LB: > { %s3309_s26 = sadd.s32 4294967295, %s4600_s25   ;;  %s3310_s27 = sadd.s32 4294967294, %s4600_s25   ;;  %s4600_s25 = sphi %s4648_s25, %s22_s25   ;;  %s4596_s24 = sphi %s4646_s24, %s5576_s24   ;;  %s4592_s23 = sphi %s4644_s23, %s5575_s23   ;;  %s4588_s22 = sphi %s4642_s22, %s5574_s22   ;;  %s4584_s21 = sphi %s4640_s21, %s5573_s21   ;;  %s4580_s20 = sphi %s4638_s20, %s5572_s20   ;;  %s4576_s19 = sphi %s4636_s19, %s5571_s19   ;;  %s4572_s18 = sphi %s4634_s18, %s5570_s18  }
   0x8   : > { %s31_s28 = sadd.s32 1, %s4592_s23  ;;  %s34_s29 = sadd.s32 1, %s4596_s24 }
   0x9   : > { %p32_p0 = scmp.ge.s32.totalorder %s31_s28, 3  ;;  %p151_p1 = scmp.ne.s32.totalorder %s4580_s20, %s4576_s19 }
   0xa   : > { %p152_p2 = scmp.eq.s32.totalorder %s3309_s26, 5  ;;  %p157_p5 = scmp.ne.s32.totalorder %s4576_s19, %s4572_s18 }
   0xb   : > { %s5578_s28 = smov (%p32_p0, %s31_s28), 0  ;;  %s5580_s29 = smov (!%p32_p0, %s34_s29), %s4596_s24 }
   0xc   : > { %s137_s30 = ssub.s32 %s4592_s23, %s5578_s28  ;;  %p4685_p3 = por %p152_p2, %p151_p1 }
   0xd   : > { %p36_p4 = scmp.ge.s32.totalorder %s5580_s29, 2  ;;  %p158_p6 = scmp.eq.s32.totalorder %s3310_s27, 5 }
   0xe   : > { %p3313_p7 = scmp.ge.s32.totalorder %s4600_s25, 1  ;;  %p222_p9 = scmp.lt.s32.totalorder %s4600_s25, 7 }
   0xf   : > { %s5582_s29 = smov (%p36_p4, %s5580_s29), 0  ;;  %p4694_p8 = por %p158_p6, %p157_p5 }
  0x10   : > { %s136_s8 = ssub.s32 %s4596_s24, %s5582_s29  ;;  %s141_s9 = sadd.s32 1, %s4580_s20 }
  0x11   : > { %s138_s10 = sor.u32 %s137_s30, %s136_s8  ;;  %p223_p10 = pnand %p3313_p7, %p222_p9 }
  0x12   : > { %p139_p11 = scmp.eq.s32.totalorder %s138_s10, 0  ;;  %v3317_v0 = vld [vmem:[%s5561_s1 + $0x2] sm:$0x3] (!%p223_p10)  ;;  %vm433_vm0 = vcmask (!%p223_p10), 1041408   ;;  %v4711_v1 = vld [vmem:[%s5561_s1 + $0x8] sm:$0x3] (!%p223_p10) }
  0x13   : > { %226 = sbr.rel (%p223_p10) target bundleno = 594 (0x252), region = 32  ;;  %p266_p12 = scmp.lt.s32.totalorder (!%p223_p10), %s4588_s22, 1  ;;  %4383 = vmatprep.subr.msk.bf16.mxu1 (!%p223_p10), %vm433_vm0, %v3317_v0  ;;  %4387 = vmatprep.subr.msk.bf16.mxu0 (!%p223_p10), %vm433_vm0, %v4711_v1  ;;  %v435_v2 = vsel (!%p223_p10), %vm433_vm0, %v3317_v0, 0  ;;  %v4720_v3 = vsel (!%p223_p10), %vm433_vm0, %v4711_v1, 0  ;;  %v333_v4 = vld [vmem:[%s5561_s1] sm:$0x3] (!%p223_p10) }
  0x14   : > { %s4703_s11 = scalar_select %p139_p11, %s4580_s20, %s141_s9  }
  0x15   : > { %p268_p13 = scmp.lt.s32.totalorder (!%p223_p10), %s4584_s21, 2  ;;  %3820 = vmatpush3.bf16.msra.mxu1 (!%p223_p10), %v435_v2  ;;  %3956 = vmatpush3.bf16.msra.mxu0 (!%p223_p10), %v4720_v3  ;;  %v3497_v5 = vld [vmem:[%s5561_s1 + $0xa] sm:$0x3] (!%p223_p10)  ;;  %vm384_vm1 = vcmask (!%p223_p10), 31744   ;;  %v647_v14 = vsel (!%p223_p10), %vm433_vm0, %v333_v4, 0  ;;  %vm2909_vm2 = vcmask (!%p223_p10), 64512  }
  0x16   : > { %4384 = vmatprep.subr.msk.bf16.mxu1 (!%p223_p10), %vm433_vm0, %v333_v4  ;;  %4389 = vmatprep.subr.msk.bf16.mxu0 (!%p223_p10), %vm433_vm0, %v3497_v5  ;;  %v1792_v18 = vsel (!%p223_p10), %vm433_vm0, %v3497_v5, 0  ;;  %v3546_v20 = vld [vmem:[%s5561_s1 + $0xc] sm:$0x3] (!%p223_p10)  ;;  %v4770_v21 = vld [vmem:[%s5561_s1 + $0x4] sm:$0x3] (!%p223_p10)  ;;  %vm3011_vm3 = vcmask (!%p223_p10), 57344  }
  0x17   : > { %v2087_v52 = vsel (!%p223_p10), %vm433_vm0, %v3546_v20, 0  ;;  %v4849_v53 = vld [vmem:[%s5561_s1 + $0xe] sm:$0x3] (!%p223_p10) }
  0x1a   : > { %s4728_s26 = scalar_select %p266_p12, %s4588_s22, 1 }
  0x1b   : > { %s4734_s8 = scalar_select %p268_p13, %s4584_s21, 2 }
  0x1c   : > { %s4394_s9 = smul.u32 162, %s4728_s26 }
  0x1d   : > { %s4393_s10 = smul.u32 54, %s4734_s8  ;;  %s3315_s27 = sshll.u32 %s4734_s8, 5 }
  0x1e   : > { %s5463_s8 = sand.u32 1, %s4576_s19  }
  0x1f   : > { %s272_s12 = sadd.s32 %s4394_s9, %s4393_s10  ;;  %s4602_s10 = smov [#allocation2]  }
  0x20   : > { %s3314_s13 = sshll.u32 %s272_s12, 3  ;;  %s4478_s12 = sshll.u32 %s4602_s10, 4  ;;  %s4479_s12 = int_to_ptr.vmem [resolvable:$false] %s4478_s12 }
  0x21   : > { %s4743_s16 = scalar_lea.vmem %s5560_s0, %s3314_s13 }
  0x22   : > { %v334_v6 = vld [vmem:[%s4743_s16 + $0x1] sm:$0xff]  ;;  %v335_v7 = vld [vmem:[%s4743_s16 + $0x9] sm:$0xff]  ;;  %v3416_v8 = vld [vmem:[%s4743_s16 + $0x19] sm:$0xff] }
  0x23   : > { %v366_v9 = vpack.c.bf16 %v335_v7, %v334_v6  ;;  %v3417_v10 = vld [vmem:[%s4743_s16 + $0x21] sm:$0xff]  ;;  %v3418_v11 = vld [vmem:[%s4743_s16 + $0x31] sm:$0xff]  ;;  %v3419_v12 = vld [vmem:[%s4743_s16 + $0x39] sm:$0xff] }
  0x24   : > { %v1431_v13 = vpack.c.bf16 %v3417_v10, %v3416_v8  ;;  %v4752_v15 = vpack.c.bf16 %v3419_v12, %v3418_v11  ;;  %v3420_v16 = vld [vmem:[%s4743_s16 + $0x49] sm:$0xff]  ;;  %v3421_v17 = vld [vmem:[%s4743_s16 + $0x51] sm:$0xff]  ;;  %v3422_v22 = vld [vmem:[%s4743_s16 + $0x61] sm:$0xff] }
  0x25   : > { %3821 = vmatprep.mubr.msk.bf16.mxu1 %vm384_vm1, %v366_v9  ;;  %v4758_v19 = vpack.c.bf16 %v3421_v17, %v3420_v16  ;;  %v3423_v23 = vld [vmem:[%s4743_s16 + $0x69] sm:$0xff]  ;;  %v3424_v24 = vld [vmem:[%s4743_s16 + $0x79] sm:$0xff]  ;;  %v3425_v25 = vld [vmem:[%s4743_s16 + $0x81] sm:$0xff] }
  0x26   : > { %3957 = vmatprep.mubr.msk.bf16.mxu0 %vm384_vm1, %v1431_v13  ;;  %3822 = vmatmul.mubr.msk.bf16.vlgmr.msra.gmra.mrb[0].mxu1 %vm384_vm1, %v1431_v13  ;;  %v4783_v26 = vpack.c.bf16 %v3423_v23, %v3422_v22  ;;  %v4785_v27 = vpack.c.bf16 %v3425_v25, %v3424_v24  ;;  %v3426_v28 = vld [vmem:[%s4743_s16 + $0x91] sm:$0xff]  ;;  %v3427_v29 = vld [vmem:[%s4743_s16 + $0x99] sm:$0xff]  ;;  %v3428_v30 = vld [vmem:[%s4743_s16 + $0xa9] sm:$0xff] }
  0x27   : > { %3854 = vmatpush3.bf16.msra.mxu1 %v647_v14  ;;  %3958 = vmatmul.mubr.msk.bf16.vlgmr.msra.gmra.mrb[0].mxu0 %vm384_vm1, %v4752_v15  ;;  %v3429_v31 = vld [vmem:[%s4743_s16 + $0xb1] sm:$0xff]  ;;  %v4799_v32 = vpack.c.bf16 %v3427_v29, %v3426_v28  ;;  %v3430_v34 = vld [vmem:[%s4743_s16 + $0xc1] sm:$0xff]  ;;  %v3431_v35 = vld [vmem:[%s4743_s16 + $0xc9] sm:$0xff] }
  0x28   : > { %3990 = vmatpush3.bf16.msra.mxu0 %v1792_v18  ;;  %3825 = vmatprep.mubr.msk.bf16.mxu1 %vm384_vm1, %v4752_v15  ;;  %v4801_v33 = vpack.c.bf16 %v3429_v31, %v3428_v30  ;;  %v3465_v36 = vld [vmem:[%s4743_s16 + $0x1a] sm:$0xff]  ;;  %v3466_v37 = vld [vmem:[%s4743_s16 + $0x22] sm:$0xff]  ;;  %v4815_v38 = vpack.c.bf16 %v3431_v35, %v3430_v34  ;;  %v3467_v42 = vld [vmem:[%s4743_s16 + $0x32] sm:$0xff] }
  0x29   : > { %3961 = vmatprep.mubr.msk.bf16.mxu0 %vm384_vm1, %v4758_v19  ;;  %4390 = vmatprep.subr.msk.bf16.mxu0 %vm433_vm0, %v3546_v20  ;;  %v4817_v39 = vpack.c.bf16 %v3466_v37, %v3465_v36  ;;  %v352_v40 = vld [vmem:[%s4743_s16 + $0xd9] sm:$0xff]  ;;  %v353_v41 = vld [vmem:[%s4743_s16 + $0xe1] sm:$0xff]  ;;  %v354_v44 = vld [vmem:[%s4743_s16 + $0xf1] sm:$0xff] }
  0x2a   : > { %4385 = vmatprep.subr.msk.bf16.mxu1 %vm433_vm0, %v4770_v21  ;;  %v3468_v43 = vld [vmem:[%s4743_s16 + $0x3a] sm:$0xff]  ;;  %v3469_v46 = vld [vmem:[%s4743_s16 + $0x4a] sm:$0xff]  ;;  %v3470_v47 = vld [vmem:[%s4743_s16 + $0x52] sm:$0xff]  ;;  %v4835_v48 = vpack.c.bf16 %v353_v41, %v352_v40 }
  0x2b   : > { %v355_v45 = vld [vmem:[%s4743_s16 + $0xf9] sm:$0xff]  ;;  %v4837_v49 = vpack.c.bf16 %v3468_v43, %v3467_v42  ;;  %v4841_v51 = vpack.c.bf16 %v3470_v47, %v3469_v46  ;;  %v356_v54 = vld [vmem:[%s4743_s16 + $0x109] sm:$0xff]  ;;  %v357_v55 = vld [vmem:[%s4743_s16 + $0x111] sm:$0xff]  ;;  %v909_v47 = vsel %vm433_vm0, %v4770_v21, 0 }
  0x2c   : > { %v4839_v50 = vpack.c.bf16 %v355_v45, %v354_v44  ;;  %v3471_v56 = vld [vmem:[%s4743_s16 + $0x62] sm:$0xff]  ;;  %v3472_v57 = vld [vmem:[%s4743_s16 + $0x6a] sm:$0xff]  ;;  %v3473_v60 = vld [vmem:[%s4743_s16 + $0x7a] sm:$0xff]  ;;  %v4867_v62 = vpack.c.bf16 %v357_v55, %v356_v54 }
  0x2d   : > { %v358_v58 = vld [vmem:[%s4743_s16 + $0x121] sm:$0xff]  ;;  %v359_v59 = vld [vmem:[%s4743_s16 + $0x129] sm:$0xff]  ;;  %v4869_v63 = vpack.c.bf16 %v3472_v57, %v3471_v56  ;;  %v360_v4 = vld [vmem:[%s4743_s16 + $0x139] sm:$0xff] }
  0x2e   : > { %3826 = vmatmul.mubr.msk.bf16.gmra.mrb[4].mxu1 %vm384_vm1, %v4758_v19  ;;  %v3474_v61 = vld [vmem:[%s4743_s16 + $0x82] sm:$0xff]  ;;  %v4871_v0 = vpack.c.bf16 %v359_v59, %v358_v58  ;;  %v3475_v6 = vld [vmem:[%s4743_s16 + $0x92] sm:$0xff]  ;;  %v3476_v7 = vld [vmem:[%s4743_s16 + $0x9a] sm:$0xff] }
  0x2f   : > { %3962 = vmatmul.mubr.msk.bf16.gmra.mrb[4].mxu0 %vm384_vm1, %v4783_v26  ;;  %3829 = vmatprep.mubr.msk.bf16.mxu1 %vm384_vm1, %v4783_v26  ;;  %v4873_v2 = vpack.c.bf16 %v3474_v61, %v3473_v60  ;;  %v361_v5 = vld [vmem:[%s4743_s16 + $0x141] sm:$0xff]  ;;  %v362_v8 = vld [vmem:[%s4743_s16 + $0x151] sm:$0xff]  ;;  %v363_v9 = vld [vmem:[%s4743_s16 + $0x159] sm:$0xff]  ;;  %v4893_v13 = vpack.c.bf16 %v3476_v7, %v3475_v6 }
  0x30   : > { %3965 = vmatprep.mubr.msk.bf16.mxu0 %vm384_vm1, %v4785_v27  ;;  %v3477_v10 = vld [vmem:[%s4743_s16 + $0xaa] sm:$0xff]  ;;  %v3478_v11 = vld [vmem:[%s4743_s16 + $0xb2] sm:$0xff]  ;;  %v4891_v12 = vpack.c.bf16 %v361_v5, %v360_v4  ;;  %v4895_v14 = vpack.c.bf16 %v363_v9, %v362_v8  ;;  %v3479_v20 = vld [vmem:[%s4743_s16 + $0xc2] sm:$0xff] }
  0x31   : > { %v4897_v16 = vpack.c.bf16 %v3478_v11, %v3477_v10  ;;  %v364_v17 = vld [vmem:[%s4743_s16 + $0x169] sm:$0xff]  ;;  %v365_v18 = vld [vmem:[%s4743_s16 + $0x171] sm:$0xff]  ;;  %v285_v23 = vld [vmem:[%s4743_s16] sm:$0xff] }
  0x32   : > { %v3480_v22 = vld [vmem:[%s4743_s16 + $0xca] sm:$0xff]  ;;  %v3481_v25 = vld [vmem:[%s4743_s16 + $0xda] sm:$0xff]  ;;  %v3482_v28 = vld [vmem:[%s4743_s16 + $0xe2] sm:$0xff]  ;;  %v4915_v29 = vpack.c.bf16 %v365_v18, %v364_v17 }
  0x33   : > { %v286_v24 = vld [vmem:[%s4743_s16 + $0x8] sm:$0xff]  ;;  %v4917_v30 = vpack.c.bf16 %v3480_v22, %v3479_v20  ;;  %v4919_v34 = vpack.c.bf16 %v3482_v28, %v3481_v25  ;;  %v287_v35 = vld [vmem:[%s4743_s16 + $0x18] sm:$0xff]  ;;  %v288_v36 = vld [vmem:[%s4743_s16 + $0x20] sm:$0xff] }
  0x34   : > { %v317_v31 = vpack.c.bf16 %v286_v24, %v285_v23  ;;  %v3483_v37 = vld [vmem:[%s4743_s16 + $0xf2] sm:$0xff]  ;;  %v3484_v40 = vld [vmem:[%s4743_s16 + $0xfa] sm:$0xff]  ;;  %v3485_v43 = vld [vmem:[%s4743_s16 + $0x10a] sm:$0xff]  ;;  %v4936_v45 = vpack.c.bf16 %v288_v36, %v287_v35 }
  0x35   : > { %v289_v41 = vld [vmem:[%s4743_s16 + $0x30] sm:$0xff]  ;;  %v290_v42 = vld [vmem:[%s4743_s16 + $0x38] sm:$0xff]  ;;  %v4938_v46 = vpack.c.bf16 %v3484_v40, %v3483_v37  ;;  %v4951_v55 = vld [vmem:[%s5561_s1 + $0x6] sm:$0x3] }
  0x36   : > { %3830 = vmatmul.mubr.msk.bf16.gmra.mrb[8].mxu1 %vm384_vm1, %v4785_v27  ;;  %v3486_v44 = vld [vmem:[%s4743_s16 + $0x112] sm:$0xff]  ;;  %v291_v56 = vld [vmem:[%s4743_s16 + $0x48] sm:$0xff]  ;;  %v293_v59 = vld [vmem:[%s4743_s16 + $0x60] sm:$0xff] }
  0x37   : > { %3966 = vmatmul.mubr.msk.bf16.gmra.mrb[8].mxu0 %vm384_vm1, %v4799_v32  ;;  %3833 = vmatprep.mubr.msk.bf16.mxu1 %vm384_vm1, %v4799_v32  ;;  %v4944_v54 = vpack.c.bf16 %v3486_v44, %v3485_v43  ;;  %v292_v57 = vld [vmem:[%s4743_s16 + $0x50] sm:$0xff]  ;;  %v3487_v21 = vld [vmem:[%s4743_s16 + $0x122] sm:$0xff]  ;;  %v3489_v61 = vld [vmem:[%s4743_s16 + $0x13a] sm:$0xff] }
  0x38   : > { %3969 = vmatprep.mubr.msk.bf16.mxu0 %vm384_vm1, %v4801_v33  ;;  %v3488_v58 = vld [vmem:[%s4743_s16 + $0x12a] sm:$0xff]  ;;  %v3490_v4 = vld [vmem:[%s4743_s16 + $0x142] sm:$0xff]  ;;  %v4969_v5 = vpack.c.bf16 %v292_v57, %v291_v56  ;;  %v295_v9 = vld [vmem:[%s4743_s16 + $0x78] sm:$0xff] }
  0x39   : > { %v294_v60 = vld [vmem:[%s4743_s16 + $0x68] sm:$0xff]  ;;  %v4971_v6 = vpack.c.bf16 %v3488_v58, %v3487_v21  ;;  %v4975_v8 = vpack.c.bf16 %v3490_v4, %v3489_v61  ;;  %v296_v10 = vld [vmem:[%s4743_s16 + $0x80] sm:$0xff]  ;;  %v3491_v11 = vld [vmem:[%s4743_s16 + $0x152] sm:$0xff]  ;;  %v2381_v61 = vsel %vm433_vm0, %v4849_v53, 0 }
  0x3a   : > { %v4973_v7 = vpack.c.bf16 %v294_v60, %v293_v59  ;;  %v3492_v17 = vld [vmem:[%s4743_s16 + $0x15a] sm:$0xff]  ;;  %v297_v18 = vld [vmem:[%s4743_s16 + $0x90] sm:$0xff]  ;;  %v4993_v24 = vpack.c.bf16 %v296_v10, %v295_v9  ;;  %v299_v35 = vld [vmem:[%s4743_s16 + $0xa8] sm:$0xff] }
  0x3b   : > { %v298_v20 = vld [vmem:[%s4743_s16 + $0x98] sm:$0xff]  ;;  %v3493_v22 = vld [vmem:[%s4743_s16 + $0x16a] sm:$0xff]  ;;  %v4995_v25 = vpack.c.bf16 %v3492_v17, %v3491_v11  ;;  %v3495_v37 = vld [vmem:[%s4743_s16 + $0x182] sm:$0xff] }
  0x3c   : > { %v3494_v23 = vld [vmem:[%s4743_s16 + $0x172] sm:$0xff]  ;;  %v4997_v28 = vpack.c.bf16 %v298_v20, %v297_v18  ;;  %v3496_v40 = vld [vmem:[%s4743_s16 + $0x18a] sm:$0xff]  ;;  %v304_v57 = vld [vmem:[%s4743_s16 + $0xe0] sm:$0xff] }
  0x3d   : > { %v300_v36 = vld [vmem:[%s4743_s16 + $0xb0] sm:$0xff]  ;;  %v5017_v44 = vpack.c.bf16 %v3496_v40, %v3495_v37  ;;  %v303_v56 = vld [vmem:[%s4743_s16 + $0xd8] sm:$0xff]  ;;  %v307_v9 = vld [vmem:[%s4743_s16 + $0x108] sm:$0xff] }
  0x3e   : > { %3834 = vmatmul.mubr.msk.bf16.gmra.mrb[12].mxu1 %vm384_vm1, %v4801_v33  ;;  %v5015_v43 = vpack.c.bf16 %v300_v36, %v299_v35  ;;  %v305_v21 = vld [vmem:[%s4743_s16 + $0xf0] sm:$0xff]  ;;  %v306_v58 = vld [vmem:[%s4743_s16 + $0xf8] sm:$0xff]  ;;  %v5033_v59 = vpack.c.bf16 %v304_v57, %v303_v56  ;;  %v310_v11 = vld [vmem:[%s4743_s16 + $0x128] sm:$0xff] }
  0x3f   : > { %3970 = vmatmul.mubr.msk.bf16.gmra.mrb[12].mxu0 %vm384_vm1, %v4815_v38  ;;  %3837 = vmatprep.mubr.msk.bf16.mxu1 %vm384_vm1, %v4815_v38  ;;  %v5035_v60 = vpack.c.bf16 %v306_v58, %v305_v21  ;;  %v3644_v4 = vld [vmem:[%s5561_s1 + $0x10] sm:$0x3]  ;;  %v311_v20 = vld [vmem:[%s4743_s16 + $0x138] sm:$0xff]  ;;  %v315_v40 = vld [vmem:[%s4743_s16 + $0x168] sm:$0xff]  ;;  %v1204_v58 = vsel %vm433_vm0, %v4951_v55, 0 }
  0x40   : > { %3991 = vmatprep.mubr.msk.bf16.mxu0 %vm384_vm1, %v4817_v39  ;;  %v308_v10 = vld [vmem:[%s4743_s16 + $0x110] sm:$0xff]  ;;  %v314_v35 = vld [vmem:[%s4743_s16 + $0x158] sm:$0xff] }
  0x41   : > { %v5055_v17 = vpack.c.bf16 %v308_v10, %v307_v9  ;;  %v811_v56 = vld [vmem:[%s4743_s16 + $0xa] sm:$0xff]  ;;  %v3545_v9 = vld [vmem:[%s4743_s16 + $0x1a0] sm:$0xff] }
  0x46   : > { %3838 = vmatmul.mubr.msk.bf16.gmra.mrb[16].mxu1 %vm384_vm1, %v4835_v48 }
  0x47   : > { %3992 = vmatmul.mubr.msk.bf16.vlgmr.msra.gmra.mrb[0].mxu0 %vm384_vm1, %v4837_v49  ;;  %3841 = vmatprep.mubr.msk.bf16.mxu1 %vm384_vm1, %v4839_v50 }
  0x48   : > { %4024 = vmatpush3.bf16.msra.mxu0 %v2087_v52  ;;  %3995 = vmatprep.mubr.msk.bf16.mxu0 %vm384_vm1, %v4841_v51  ;;  %v4942_v52 = vpack.c.bf16 %v290_v42, %v289_v41  ;;  %v301_v41 = vld [vmem:[%s4743_s16 + $0xc0] sm:$0xff]  ;;  %v302_v42 = vld [vmem:[%s4743_s16 + $0xc8] sm:$0xff] }
  0x49   : > { %4391 = vmatprep.subr.msk.bf16.mxu0 %vm433_vm0, %v4849_v53  ;;  %v309_v53 = vld [vmem:[%s4743_s16 + $0x120] sm:$0xff] }
  0x4a   : > { %v5057_v18 = vpack.c.bf16 %v310_v11, %v309_v53  ;;  %v2675_v53 = vsel %vm433_vm0, %v3644_v4, 0 }
  0x4e   : > { %3842 = vmatmul.mubr.msk.bf16.gmra.mrb[20].mxu1 %vm384_vm1, %v4867_v62 }
  0x4f   : > { %3996 = vmatmul.mubr.msk.bf16.gmra.mrb[4].mxu0 %vm384_vm1, %v4869_v63  ;;  %3845 = vmatprep.mubr.msk.bf16.mxu1 %vm384_vm1, %v4871_v0 }
  0x50   : > { %3999 = vmatprep.mubr.msk.bf16.mxu0 %vm384_vm1, %v4873_v2 }
  0x56   : > { %3846 = vmatmul.mubr.msk.bf16.gmra.mrb[24].mxu1 %vm384_vm1, %v4891_v12 }
  0x57   : > { %4000 = vmatmul.mubr.msk.bf16.gmra.mrb[8].mxu0 %vm384_vm1, %v4893_v13  ;;  %3849 = vmatprep.mubr.msk.bf16.mxu1 %vm384_vm1, %v4895_v14 }
  0x58   : > { %4003 = vmatprep.mubr.msk.bf16.mxu0 %vm384_vm1, %v4897_v16 }
  0x5e   : > { %3850 = vmatmul.mubr.msk.bf16.gmra.mrb[28].mxu1 %vm384_vm1, %v4915_v29 }
  0x5f   : > { %4004 = vmatmul.mubr.msk.bf16.gmra.mrb[12].mxu0 %vm384_vm1, %v4917_v30  ;;  %3855 = vmatprep.mubr.msk.bf16.mxu1 %vm384_vm1, %v317_v31  ;;  %v4999_v31 = vpack.c.bf16 %v3494_v23, %v3493_v22  ;;  %v312_v22 = vld [vmem:[%s4743_s16 + $0x140] sm:$0xff]  ;;  %v313_v23 = vld [vmem:[%s4743_s16 + $0x150] sm:$0xff] }
  0x60   : > { %4007 = vmatprep.mubr.msk.bf16.mxu0 %vm384_vm1, %v4919_v34  ;;  %v5071_v36 = vpack.c.bf16 %v312_v22, %v311_v20  ;;  %v5073_v37 = vpack.c.bf16 %v314_v35, %v313_v23 }
  0x66   : > { %3856 = vmatmul.mubr.msk.bf16.vlgmr.msra.gmra.mrb[0].mxu1 %vm384_vm1, %v4936_v45 }
  0x67   : > { %3888 = vmatpush3.bf16.msra.mxu1 %v909_v47  ;;  %4008 = vmatmul.mubr.msk.bf16.gmra.mrb[16].mxu0 %vm384_vm1, %v4938_v46  ;;  %v5019_v47 = vpack.c.bf16 %v302_v42, %v301_v41  ;;  %v316_v41 = vld [vmem:[%s4743_s16 + $0x170] sm:$0xff]  ;;  %v810_v42 = vld [vmem:[%s4743_s16 + $0x2] sm:$0xff] }
  0x68   : > { %3859 = vmatprep.mubr.msk.bf16.mxu1 %vm384_vm1, %v4942_v52  ;;  %4011 = vmatprep.mubr.msk.bf16.mxu0 %vm384_vm1, %v4944_v54  ;;  %v5087_v57 = vpack.c.bf16 %v316_v41, %v315_v40  ;;  %v842_v21 = vpack.c.bf16 %v811_v56, %v810_v42 }
  0x69   : > { %4386 = vmatprep.subr.msk.bf16.mxu1 %vm433_vm0, %v4951_v55  ;;  %v3543_v55 = vld [vmem:[%s4743_s16 + $0x188] sm:$0xff] }
  0x6e   : > { %3860 = vmatmul.mubr.msk.bf16.gmra.mrb[4].mxu1 %vm384_vm1, %v4969_v5 }
  0x6f   : > { %4012 = vmatmul.mubr.msk.bf16.gmra.mrb[20].mxu0 %vm384_vm1, %v4971_v6  ;;  %3863 = vmatprep.mubr.msk.bf16.mxu1 %vm384_vm1, %v4973_v7 }
  0x70   : > { %4015 = vmatprep.mubr.msk.bf16.mxu0 %vm384_vm1, %v4975_v8 }
  0x76   : > { %3864 = vmatmul.mubr.msk.bf16.gmra.mrb[8].mxu1 %vm384_vm1, %v4993_v24 }
  0x77   : > { %4016 = vmatmul.mubr.msk.bf16.gmra.mrb[24].mxu0 %vm384_vm1, %v4995_v25  ;;  %3867 = vmatprep.mubr.msk.bf16.mxu1 %vm384_vm1, %v4997_v28 }
  0x78   : > { %4019 = vmatprep.mubr.msk.bf16.mxu0 %vm384_vm1, %v4999_v31 }
  0x7e   : > { %3868 = vmatmul.mubr.msk.bf16.gmra.mrb[12].mxu1 %vm384_vm1, %v5015_v43 }
  0x7f   : > { %4020 = vmatmul.mubr.msk.bf16.gmra.mrb[28].mxu0 %vm384_vm1, %v5017_v44  ;;  %3871 = vmatprep.mubr.msk.bf16.mxu1 %vm384_vm1, %v5019_v47 }
  0x80   : > { %4025 = vmatprep.mubr.msk.bf16.mxu0 %vm384_vm1, %v4942_v52 }
  0x86   : > { %3872 = vmatmul.mubr.msk.bf16.gmra.mrb[16].mxu1 %vm384_vm1, %v5033_v59 }
  0x87   : > { %4026 = vmatmul.mubr.msk.bf16.vlgmr.msra.gmra.mrb[0].mxu0 %vm384_vm1, %v4969_v5  ;;  %3875 = vmatprep.mubr.msk.bf16.mxu1 %vm384_vm1, %v5035_v60 }
  0x88   : > { %4058 = vmatpush3.bf16.msra.mxu0 %v2381_v61  ;;  %4029 = vmatprep.mubr.msk.bf16.mxu0 %vm384_vm1, %v4973_v7 }
  0x89   : > { %4392 = vmatprep.subr.msk.bf16.mxu0 %vm433_vm0, %v3644_v4 }
  0x8e   : > { %3876 = vmatmul.mubr.msk.bf16.gmra.mrb[20].mxu1 %vm384_vm1, %v5055_v17 }
  0x8f   : > { %4030 = vmatmul.mubr.msk.bf16.gmra.mrb[4].mxu0 %vm384_vm1, %v4993_v24  ;;  %3879 = vmatprep.mubr.msk.bf16.mxu1 %vm384_vm1, %v5057_v18 }
  0x90   : > { %4033 = vmatprep.mubr.msk.bf16.mxu0 %vm384_vm1, %v4997_v28 }
  0x96   : > { %3880 = vmatmul.mubr.msk.bf16.gmra.mrb[24].mxu1 %vm384_vm1, %v5071_v36 }
  0x97   : > { %4034 = vmatmul.mubr.msk.bf16.gmra.mrb[8].mxu0 %vm384_vm1, %v5015_v43  ;;  %3883 = vmatprep.mubr.msk.bf16.mxu1 %vm384_vm1, %v5073_v37 }
  0x98   : > { %4037 = vmatprep.mubr.msk.bf16.mxu0 %vm384_vm1, %v5019_v47 }
  0x9e   : > { %3884 = vmatmul.mubr.msk.bf16.gmra.mrb[28].mxu1 %vm384_vm1, %v5087_v57 }
  0x9f   : > { %4038 = vmatmul.mubr.msk.bf16.gmra.mrb[12].mxu0 %vm384_vm1, %v5033_v59  ;;  %3889 = vmatprep.mubr.msk.bf16.mxu1 %vm384_vm1, %v842_v21 }
  0xa0   : > { %4041 = vmatprep.mubr.msk.bf16.mxu0 %vm384_vm1, %v5035_v60 }
  0xa6   : > { %3890 = vmatmul.mubr.msk.bf16.vlgmr.msra.gmra.mrb[0].mxu1 %vm384_vm1, %v4817_v39  ;;  %v3542_v39 = vld [vmem:[%s4743_s16 + $0x180] sm:$0xff] }
  0xa7   : > { %3922 = vmatpush3.bf16.msra.mxu1 %v1204_v58  ;;  %4042 = vmatmul.mubr.msk.bf16.gmra.mrb[16].mxu0 %vm384_vm1, %v5055_v17  ;;  %v5118_v61 = vpack.c.bf16 %v3543_v55, %v3542_v39 }
  0xa8   : > { %3893 = vmatprep.mubr.msk.bf16.mxu1 %vm384_vm1, %v4837_v49  ;;  %4045 = vmatprep.mubr.msk.bf16.mxu0 %vm384_vm1, %v5057_v18 }
  0xa9   : > { %4388 = vmatprep.subr.msk.bf16.mxu1 %vm433_vm0, %v4711_v1  ;;  %v3544_v1 = vld [vmem:[%s4743_s16 + $0x198] sm:$0xff] }
  0xaa   : > { %v2035_v10 = vpack.c.bf16 %v3545_v9, %v3544_v1 }
  0xae   : > { %3894 = vmatmul.mubr.msk.bf16.gmra.mrb[4].mxu1 %vm384_vm1, %v4841_v51 }
  0xaf   : > { %4046 = vmatmul.mubr.msk.bf16.gmra.mrb[20].mxu0 %vm384_vm1, %v5071_v36  ;;  %3897 = vmatprep.mubr.msk.bf16.mxu1 %vm384_vm1, %v4869_v63 }
  0xb0   : > { %4049 = vmatprep.mubr.msk.bf16.mxu0 %vm384_vm1, %v5073_v37 }
  0xb6   : > { %3898 = vmatmul.mubr.msk.bf16.gmra.mrb[8].mxu1 %vm384_vm1, %v4873_v2 }
  0xb7   : > { %4050 = vmatmul.mubr.msk.bf16.gmra.mrb[24].mxu0 %vm384_vm1, %v5087_v57  ;;  %3901 = vmatprep.mubr.msk.bf16.mxu1 %vm384_vm1, %v4893_v13 }
  0xb8   : > { %4053 = vmatprep.mubr.msk.bf16.mxu0 %vm384_vm1, %v5118_v61 }
  0xbe   : > { %3902 = vmatmul.mubr.msk.bf16.gmra.mrb[12].mxu1 %vm384_vm1, %v4897_v16 }
  0xbf   : > { %4054 = vmatmul.mubr.msk.bf16.gmra.mrb[28].mxu0 %vm384_vm1, %v2035_v10  ;;  %3905 = vmatprep.mubr.msk.bf16.mxu1 %vm384_vm1, %v4917_v30 }
  0xc0   : > { %4059 = vmatprep.mubr.msk.bf16.mxu0 %vm384_vm1, %v4752_v15  ;;  %v3592_v15 = vld [vmem:[%s4743_s16 + $0x189] sm:$0xff] }
  0xc6   : > { %3906 = vmatmul.mubr.msk.bf16.gmra.mrb[16].mxu1 %vm384_vm1, %v4919_v34 }
  0xc7   : > { %4060 = vmatmul.mubr.msk.bf16.vlgmr.msra.gmra.mrb[0].mxu0 %vm384_vm1, %v4758_v19  ;;  %3909 = vmatprep.mubr.msk.bf16.mxu1 %vm384_vm1, %v4938_v46 }
  0xc8   : > { %4092 = vmatpush3.bf16.msra.mxu0 %v2675_v53  ;;  %4063 = vmatprep.mubr.msk.bf16.mxu0 %vm384_vm1, %v4783_v26  ;;  %v3593_v26 = vld [vmem:[%s4743_s16 + $0x199] sm:$0xff] }
  0xce   : > { %3910 = vmatmul.mubr.msk.bf16.gmra.mrb[20].mxu1 %vm384_vm1, %v4944_v54 }
  0xcf   : > { %4064 = vmatmul.mubr.msk.bf16.gmra.mrb[4].mxu0 %vm384_vm1, %v4785_v27  ;;  %3913 = vmatprep.mubr.msk.bf16.mxu1 %vm384_vm1, %v4971_v6  ;;  %v3594_v27 = vld [vmem:[%s4743_s16 + $0x1a1] sm:$0xff] }
  0xd0   : > { %4067 = vmatprep.mubr.msk.bf16.mxu0 %vm384_vm1, %v4799_v32  ;;  %v2329_v32 = vpack.c.bf16 %v3594_v27, %v3593_v26 }
  0xd6   : > { %3914 = vmatmul.mubr.msk.bf16.gmra.mrb[24].mxu1 %vm384_vm1, %v4975_v8 }
  0xd7   : > { %4068 = vmatmul.mubr.msk.bf16.gmra.mrb[8].mxu0 %vm384_vm1, %v4801_v33  ;;  %3917 = vmatprep.mubr.msk.bf16.mxu1 %vm384_vm1, %v4995_v25  ;;  %v3642_v33 = vld [vmem:[%s4743_s16 + $0x19a] sm:$0xff] }
  0xd8   : > { %4071 = vmatprep.mubr.msk.bf16.mxu0 %vm384_vm1, %v4815_v38  ;;  %v3643_v38 = vld [vmem:[%s4743_s16 + $0x1a2] sm:$0xff] }
  0xde   : > { %3918 = vmatmul.mubr.msk.bf16.gmra.mrb[28].mxu1 %vm384_vm1, %v4999_v31 }
  0xdf   : > { %4072 = vmatmul.mubr.msk.bf16.gmra.mrb[12].mxu0 %vm384_vm1, %v4835_v48  ;;  %3923 = vmatprep.mubr.msk.bf16.mxu1 %vm384_vm1, %v4936_v45 }
  0xe0   : > { %4075 = vmatprep.mubr.msk.bf16.mxu0 %vm384_vm1, %v4839_v50 }
  0xe6   : > { %3924 = vmatmul.mubr.msk.bf16.vlgmr.msra.gmra.mrb[0].mxu1 %vm384_vm1, %v4942_v52 }
  0xe7   : > { %4126 = vmatpush3.bf16.msra.mxu1 %v4720_v3  ;;  %4076 = vmatmul.mubr.msk.bf16.gmra.mrb[16].mxu0 %vm384_vm1, %v4867_v62  ;;  %v3591_v3 = vld [vmem:[%s4743_s16 + $0x181] sm:$0xff]  ;;  %s4395_s16 = smul.u32 96, %s4728_s26 }
  0xe8   : > { %3927 = vmatprep.mubr.msk.bf16.mxu1 %vm384_vm1, %v4969_v5  ;;  %4079 = vmatprep.mubr.msk.bf16.mxu0 %vm384_vm1, %v4871_v0  ;;  %v2328_v19 = vpack.c.bf16 %v3592_v15, %v3591_v3  ;;  %s4396_s26 = smul.u32 3, %s4588_s22  ;;  %s5566_s22 = scalar_lea.vmem [#allocation4], %s5463_s8 }
  0xe9   : > { %s281_s30 = sadd.s32 %s4395_s16, %s3315_s27  ;;  %s259_s27 = scalar_lea.vmem [#allocation2], %s5463_s8 }
  0xea   : > { %s3316_s9 = sshll.u32 %s281_s30, 3  ;;  %s3142_s17 = sadd.s32 %s4584_s21, %s4396_s26 }
  0xeb   : > { %s5291_s15 = scalar_lea.vmem %s5563_s3, %s3316_s9  ;;  %s3662_s16 = sshll.u32 %s3142_s17, 4 }
  0xec   : > { %s3146_s30 = sshll.u32 %s259_s27, 4  ;;  %s3161_s9 = sshll.u32 %s5566_s22, 4  ;;  %s5475_s30 = int_to_ptr.vmem [resolvable:$true] %s3146_s30  ;;  %s5483_s9 = int_to_ptr.vmem [resolvable:$true] %s3161_s9 }
  0xed   : > { %s5473_s13 = scalar_lea.hbm %s5564_s4, %s3662_s16  ;;  %s3125_s26 = scalar_lea.sflag [#allocation3], %s5463_s8 }
  0xee   : > { %3928 = vmatmul.mubr.msk.bf16.gmra.mrb[4].mxu1 %vm384_vm1, %v4973_v7  ;;  %s4474_s17 = scalar_lea.vmem %s5475_s30, 16  ;;  %s4480_s22 = scalar_lea.vmem %s4479_s12, 32 }
  0xef   : > { %4080 = vmatmul.mubr.msk.bf16.gmra.mrb[20].mxu0 %vm384_vm1, %v4891_v12  ;;  %3931 = vmatprep.mubr.msk.bf16.mxu1 %vm384_vm1, %v4993_v24  ;;  %p4475_p0 = scmp.ne.s32.totalorder %s5475_s30, %s4474_s17  ;;  %p4481_p4 = scmp.lt.s32.totalorder %s5475_s30, %s4479_s12 }
  0xf0   : > { %4083 = vmatprep.mubr.msk.bf16.mxu0 %vm384_vm1, %v4895_v14  ;;  %p4482_p5 = scmp.lt.s32.totalorder %s4480_s22, %s4474_s17 }
  0xf1   : > { %p4476_p1 = pnand %p4475_p0, %p4685_p3 }
  0xf2   : > { %p4483_p6 = por %p4482_p5, %p4481_p4 }
  0xf3   : > { %p4477_p2 = pneg %p4476_p1 }
  0xf5   : > { %p4484_p7 = pnand %p4483_p6, %p4477_p2 }
  0xf6   : > { %3932 = vmatmul.mubr.msk.bf16.gmra.mrb[8].mxu1 %vm384_vm1, %v4997_v28 }
  0xf7   : > { %4084 = vmatmul.mubr.msk.bf16.gmra.mrb[24].mxu0 %vm384_vm1, %v4915_v29  ;;  %3935 = vmatprep.mubr.msk.bf16.mxu1 %vm384_vm1, %v5015_v43 }
  0xf8   : > { %4087 = vmatprep.mubr.msk.bf16.mxu0 %vm384_vm1, %v2328_v19 }
  0xfe   : > { %3936 = vmatmul.mubr.msk.bf16.gmra.mrb[12].mxu1 %vm384_vm1, %v5019_v47 }
  0xff   : > { %4088 = vmatmul.mubr.msk.bf16.gmra.mrb[28].mxu0 %vm384_vm1, %v2329_v32  ;;  %3939 = vmatprep.mubr.msk.bf16.mxu1 %vm384_vm1, %v5033_v59 }
 0x100   : > { %4093 = vmatprep.mubr.msk.bf16.mxu0 %vm384_vm1, %v4837_v49 }
 0x106   : > { %3940 = vmatmul.mubr.msk.bf16.gmra.mrb[16].mxu1 %vm384_vm1, %v5035_v60 }
 0x107   : > { %4094 = vmatmul.mubr.msk.bf16.vlgmr.msra.gmra.mrb[0].mxu0 %vm384_vm1, %v4841_v51  ;;  %3943 = vmatprep.mubr.msk.bf16.mxu1 %vm384_vm1, %v5055_v17 }
 0x108   : > { %4097 = vmatprep.mubr.msk.bf16.mxu0 %vm384_vm1, %v4869_v63 }
 0x10e   : > { %3944 = vmatmul.mubr.msk.bf16.gmra.mrb[20].mxu1 %vm384_vm1, %v5057_v18 }
 0x10f   : > { %4098 = vmatmul.mubr.msk.bf16.gmra.mrb[4].mxu0 %vm384_vm1, %v4873_v2  ;;  %3947 = vmatprep.mubr.msk.bf16.mxu1 %vm384_vm1, %v5071_v36 }
 0x110   : > { %4101 = vmatprep.mubr.msk.bf16.mxu0 %vm384_vm1, %v4893_v13 }
 0x116   : > { %3948 = vmatmul.mubr.msk.bf16.gmra.mrb[24].mxu1 %vm384_vm1, %v5073_v37 }
 0x117   : > { %4102 = vmatmul.mubr.msk.bf16.gmra.mrb[8].mxu0 %vm384_vm1, %v4897_v16  ;;  %3951 = vmatprep.mubr.msk.bf16.mxu1 %vm384_vm1, %v5087_v57 }
 0x118   : > { %4105 = vmatprep.mubr.msk.bf16.mxu0 %vm384_vm1, %v4917_v30 }
 0x11e   : > { %3952 = vmatmul.mubr.msk.bf16.gmra.mrb[28].mxu1 %vm384_vm1, %v5118_v61 }
 0x11f   : > { %4106 = vmatmul.mubr.msk.bf16.gmra.mrb[12].mxu0 %vm384_vm1, %v4919_v34  ;;  %3973 = vmatprep.mubr.msk.bf16.mxu1 %vm384_vm1, %v4835_v48  ;;  %v2623_v48 = vpack.c.bf16 %v3643_v38, %v3642_v33 }
 0x120   : > { %4109 = vmatprep.mubr.msk.bf16.mxu0 %vm384_vm1, %v4938_v46 }
 0x126   : > { %3974 = vmatmul.mubr.msk.bf16.vlgmr.msra.gmra.mrb[16].mxu1 %vm384_vm1, %v4839_v50 }
 0x127   : > { %4110 = vmatmul.mubr.msk.bf16.gmra.mrb[16].mxu0 %vm384_vm1, %v4944_v54  ;;  %3977 = vmatprep.mubr.msk.bf16.mxu1 %vm384_vm1, %v4867_v62  ;;  %v5286_v54 = vld [vmem:[%s5562_s2] ss:$0 sm:$0xff] }
 0x128   : > { %4113 = vmatprep.mubr.msk.bf16.mxu0 %vm384_vm1, %v4971_v6 }
 0x12e   : > { %3978 = vmatmul.mubr.msk.bf16.gmra.mrb[20].mxu1 %vm384_vm1, %v4871_v0 }
 0x12f   : > { %4114 = vmatmul.mubr.msk.bf16.gmra.mrb[20].mxu0 %vm384_vm1, %v4975_v8  ;;  %3981 = vmatprep.mubr.msk.bf16.mxu1 %vm384_vm1, %v4891_v12 }
 0x130   : > { %4117 = vmatprep.mubr.msk.bf16.mxu0 %vm384_vm1, %v4995_v25 }
 0x136   : > { %3982 = vmatmul.mubr.msk.bf16.gmra.mrb[24].mxu1 %vm384_vm1, %v4895_v14 }
 0x137   : > { %4118 = vmatmul.mubr.msk.bf16.gmra.mrb[24].mxu0 %vm384_vm1, %v4999_v31  ;;  %3985 = vmatprep.mubr.msk.bf16.mxu1 %vm384_vm1, %v4915_v29 }
 0x138   : > { %4121 = vmatprep.mubr.msk.bf16.mxu0 %vm384_vm1, %v5017_v44 }
 0x13e   : > { %3986 = vmatmul.mubr.msk.bf16.gmra.mrb[28].mxu1 %vm384_vm1, %v2328_v19 }
 0x13f   : > { %4122 = vmatmul.mubr.msk.bf16.gmra.mrb[28].mxu0 %vm384_vm1, %v2623_v48 }
 0x1b9   : > { %v3925_v49 = vpop.f32.mrb[0].mxu1 }
 0x1ba   : > { %v1240_v50 = vpop.f32.mrb[1].mxu1 }
 0x1bb   : > { %v3926_v51 = vpop.f32.mrb[2].mxu1 }
 0x1bc   : > { %v1243_v62 = vpop.f32.mrb[3].mxu1 }
 0x1c1   : > { %v3929_v63 = vpop.f32.mrb[4].mxu1 }
 0x1c2   : > { %v1256_v0 = vpop.f32.mrb[5].mxu1 }
 0x1c3   : > { %v3930_v2 = vpop.f32.mrb[6].mxu1 }
 0x1c4   : > { %v1259_v12 = vpop.f32.mrb[7].mxu1 }
 0x1c9   : > { %v5265_v13 = vpop.f32.mrb[8].mxu1 }
 0x1ca   : > { %v5267_v14 = vpop.f32.mrb[9].mxu1 }
 0x1cb   : > { %v5269_v16 = vpop.f32.mrb[10].mxu1 }
 0x1cc   : > { %v5271_v29 = vpop.f32.mrb[11].mxu1 }
 0x1d1   : > { %v5273_v30 = vpop.f32.mrb[12].mxu1 }
 0x1d2   : > { %v5275_v34 = vpop.f32.mrb[13].mxu1 }
 0x1d3   : > { %v5278_v45 = vpop.f32.mrb[14].mxu1 }
 0x1d4   : > { %v5281_v46 = vpop.f32.mrb[15].mxu1 }
 0x1da   : > { %v4095_v52 = vpop.f32.mrb[0].mxu0 }
 0x1db   : > { %v4127_v5 = vadd.f32 %v4095_v52, %v3925_v49  ;;  %v2711_v6 = vpop.f32.mrb[1].mxu0 }
 0x1dc   : > { %v4128_v7 = vadd.f32 %v2711_v6, %v1240_v50  ;;  %v4096_v8 = vpop.f32.mrb[2].mxu0 }
 0x1dd   : > { %v2879_v24 = vadd.f32 %v4127_v5, %v5286_v54  ;;  %v4129_v25 = vadd.f32 %v4096_v8, %v3926_v51  ;;  %v2714_v28 = vpop.f32.mrb[3].mxu0 }
 0x1de   : > { %v2877_v31 = vadd.f32 %v4128_v7, %v5286_v54  ;;  %v4130_v43 = vadd.f32 %v2714_v28, %v1243_v62 }
 0x1df   : > { %2912 = vst.msk [vmem:[%s5291_s15 + $0x10] sm:$0xff] %vm2909_vm2, %v2879_v24  ;;  %v2880_v44 = vadd.f32 %v4129_v25, %v5286_v54  ;;  %v3015_v60 = vmul.f32 %v2879_v24, %v2879_v24  ;;  %v2945_v36 = vsel %vm2909_vm2, %v2879_v24, 0.0 }
 0x1e0   : > { %2910 = vst.msk [vmem:[%s5291_s15] sm:$0xff] %vm2909_vm2, %v2877_v31  ;;  %v3013_v47 = vmul.f32 %v2877_v31, %v2877_v31  ;;  %v2878_v59 = vadd.f32 %v4130_v43, %v5286_v54  ;;  %v2942_v4 = vsel %vm2909_vm2, %v2877_v31, 0.0 }
 0x1e1   : > { %2913 = vst.msk [vmem:[%s5291_s15 + $0x18] sm:$0xff] %vm2909_vm2, %v2880_v44  ;;  %v3016_v20 = vmul.f32 %v2880_v44, %v2880_v44  ;;  %v3048_v55 = vsel %vm2909_vm2, %v3015_v60, 0.0  ;;  %v2947_v61 = vsel %vm2909_vm2, %v2880_v44, 0.0 }
 0x1e2   : > { %2911 = vst.msk [vmem:[%s5291_s15 + $0x8] sm:$0xff] %vm2909_vm2, %v2878_v59  ;;  %v2943_v11 = vsel %vm2909_vm2, %v2878_v59, 0.0  ;;  %v3014_v17 = vmul.f32 %v2878_v59, %v2878_v59  ;;  %v4099_v18 = vpop.f32.mrb[4].mxu0  ;;  %v3045_v37 = vsel %vm2909_vm2, %v3013_v47, 0.0 }
 0x1e3   : > { %v2944_v22 = vadd.f32 %v2943_v11, %v2942_v4  ;;  %v4131_v23 = vadd.f32 %v4099_v18, %v3929_v63  ;;  %v2727_v35 = vpop.f32.mrb[5].mxu0  ;;  %v3050_v10 = vsel %vm2909_vm2, %v3016_v20, 0.0 }
 0x1e4   : > { %v3046_v40 = vsel %vm2909_vm2, %v3014_v17, 0.0  ;;  %v4132_v41 = vadd.f32 %v2727_v35, %v1256_v0  ;;  %v4100_v42 = vpop.f32.mrb[6].mxu0 }
 0x1e5   : > { %v2946_v56 = vadd.f32 %v2945_v36, %v2944_v22  ;;  %v3047_v57 = vadd.f32 %v3046_v40, %v3045_v37  ;;  %v2883_v21 = vadd.f32 %v4131_v23, %v5286_v54  ;;  %v4133_v58 = vadd.f32 %v4100_v42, %v3930_v2  ;;  %v2730_v39 = vpop.f32.mrb[7].mxu0 }
 0x1e6   : > { %v2881_v1 = vadd.f32 %v4132_v41, %v5286_v54  ;;  %v4134_v9 = vadd.f32 %v2730_v39, %v1259_v12 }
 0x1e7   : > { %v3049_v53 = vadd.f32 %v3048_v55, %v3047_v57  ;;  %2916 = vst.msk [vmem:[%s5291_s15 + $0x30] sm:$0xff] %vm2909_vm2, %v2883_v21  ;;  %v2948_v3 = vadd.f32 %v2947_v61, %v2946_v56  ;;  %v2884_v26 = vadd.f32 %v4133_v58, %v5286_v54  ;;  %v3019_v38 = vmul.f32 %v2883_v21, %v2883_v21 }
 0x1e8   : > { %2914 = vst.msk [vmem:[%s5291_s15 + $0x20] sm:$0xff] %vm2909_vm2, %v2881_v1  ;;  %v2949_v15 = vsel %vm2909_vm2, %v2881_v1, 0.0  ;;  %v3017_v19 = vmul.f32 %v2881_v1, %v2881_v1  ;;  %v2882_v27 = vadd.f32 %v4134_v9, %v5286_v54  ;;  %v2953_v12 = vsel %vm2909_vm2, %v2883_v21, 0.0 }
 0x1e9   : > { %v2950_v32 = vadd.f32 %v2949_v15, %v2948_v3  ;;  %v3051_v33 = vadd.f32 %v3050_v10, %v3049_v53  ;;  %2917 = vst.msk [vmem:[%s5291_s15 + $0x38] sm:$0xff] %vm2909_vm2, %v2884_v26  ;;  %v3020_v52 = vmul.f32 %v2884_v26, %v2884_v26 }
 0x1ea   : > { %v3052_v48 = vsel %vm2909_vm2, %v3017_v19, 0.0  ;;  %2915 = vst.msk [vmem:[%s5291_s15 + $0x28] sm:$0xff] %vm2909_vm2, %v2882_v27  ;;  %v2951_v49 = vsel %vm2909_vm2, %v2882_v27, 0.0  ;;  %v4103_v50 = vpop.f32.mrb[8].mxu0  ;;  %v3018_v63 = vmul.f32 %v2882_v27, %v2882_v27 }
 0x1eb   : > { %v3053_v51 = vadd.f32 %v3052_v48, %v3051_v33  ;;  %v2952_v62 = vadd.f32 %v2951_v49, %v2950_v32  ;;  %v4135_v0 = vadd.f32 %v4103_v50, %v5265_v13  ;;  %v2743_v2 = vpop.f32.mrb[9].mxu0  ;;  %v2955_v13 = vsel %vm2909_vm2, %v2884_v26, 0.0 }
 0x1ec   : > { %v4136_v5 = vadd.f32 %v2743_v2, %v5267_v14  ;;  %v4104_v6 = vpop.f32.mrb[10].mxu0  ;;  %v3054_v8 = vsel %vm2909_vm2, %v3018_v63, 0.0  ;;  %v3056_v14 = vsel %vm2909_vm2, %v3019_v38, 0.0  ;;  %v3058_v17 = vsel %vm2909_vm2, %v3020_v52, 0.0 }
 0x1ed   : > { %v2954_v7 = vadd.f32 %v2953_v12, %v2952_v62  ;;  %v2887_v24 = vadd.f32 %v4135_v0, %v5286_v54  ;;  %v4137_v25 = vadd.f32 %v4104_v6, %v5269_v16  ;;  %v2746_v28 = vpop.f32.mrb[11].mxu0  ;;  %v3055_v31 = vadd.f32 %v3054_v8, %v3053_v51 }
 0x1ee   : > { %v2885_v43 = vadd.f32 %v4136_v5, %v5286_v54  ;;  %v4138_v44 = vadd.f32 %v2746_v28, %v5271_v29 }
 0x1ef   : > { %2920 = vst.msk [vmem:[%s5291_s15 + $0x50] sm:$0xff] %vm2909_vm2, %v2887_v24  ;;  %v2956_v47 = vadd.f32 %v2955_v13, %v2954_v7  ;;  %v2888_v59 = vadd.f32 %v4137_v25, %v5286_v54  ;;  %v3057_v60 = vadd.f32 %v3056_v14, %v3055_v31  ;;  %v3023_v36 = vmul.f32 %v2887_v24, %v2887_v24 }
 0x1f0   : > { %2918 = vst.msk [vmem:[%s5291_s15 + $0x40] sm:$0xff] %vm2909_vm2, %v2885_v43  ;;  %v2957_v16 = vsel %vm2909_vm2, %v2885_v43, 0.0  ;;  %v3021_v4 = vmul.f32 %v2885_v43, %v2885_v43  ;;  %v2886_v11 = vadd.f32 %v4138_v44, %v5286_v54  ;;  %v2961_v42 = vsel %vm2909_vm2, %v2887_v24, 0.0 }
 0x1f1   : > { %v2958_v18 = vadd.f32 %v2957_v16, %v2956_v47  ;;  %2921 = vst.msk [vmem:[%s5291_s15 + $0x58] sm:$0xff] %vm2909_vm2, %v2888_v59  ;;  %v3059_v29 = vadd.f32 %v3058_v17, %v3057_v60  ;;  %v3024_v39 = vmul.f32 %v2888_v59, %v2888_v59 }
 0x1f2   : > { %v3060_v20 = vsel %vm2909_vm2, %v3021_v4, 0.0  ;;  %2919 = vst.msk [vmem:[%s5291_s15 + $0x48] sm:$0xff] %vm2909_vm2, %v2886_v11  ;;  %v2959_v22 = vsel %vm2909_vm2, %v2886_v11, 0.0  ;;  %v3022_v23 = vmul.f32 %v2886_v11, %v2886_v11  ;;  %v4107_v35 = vpop.f32.mrb[12].mxu0 }
 0x1f3   : > { %v2960_v37 = vadd.f32 %v2959_v22, %v2958_v18  ;;  %v4139_v40 = vadd.f32 %v4107_v35, %v5273_v30  ;;  %v2759_v41 = vpop.f32.mrb[13].mxu0  ;;  %v3061_v56 = vadd.f32 %v3060_v20, %v3059_v29  ;;  %v2963_v30 = vsel %vm2909_vm2, %v2888_v59, 0.0 }
 0x1f4   : > { %v3062_v57 = vsel %vm2909_vm2, %v3022_v23, 0.0  ;;  %v4140_v21 = vadd.f32 %v2759_v41, %v5275_v34  ;;  %v4108_v58 = vpop.f32.mrb[14].mxu0  ;;  %v3064_v34 = vsel %vm2909_vm2, %v3023_v36, 0.0  ;;  %v3066_v33 = vsel %vm2909_vm2, %v3024_v39, 0.0 }
 0x1f5   : > { %v2962_v55 = vadd.f32 %v2961_v42, %v2960_v37  ;;  %v2891_v61 = vadd.f32 %v4139_v40, %v5286_v54  ;;  %v4141_v1 = vadd.f32 %v4108_v58, %v5278_v45  ;;  %v2762_v9 = vpop.f32.mrb[15].mxu0  ;;  %v3063_v10 = vadd.f32 %v3062_v57, %v3061_v56 }
 0x1f6   : > { %v2889_v53 = vadd.f32 %v4140_v21, %v5286_v54  ;;  %v4142_v3 = vadd.f32 %v2762_v9, %v5281_v46 }
 0x1f7   : > { %2924 = vst.msk [vmem:[%s5291_s15 + $0x70] sm:$0xff] %vm2909_vm2, %v2891_v61  ;;  %v2964_v15 = vadd.f32 %v2963_v30, %v2962_v55  ;;  %v2892_v19 = vadd.f32 %v4141_v1, %v5286_v54  ;;  %v3065_v26 = vadd.f32 %v3064_v34, %v3063_v10  ;;  %v3027_v0 = vmul.f32 %v2891_v61, %v2891_v61 }
 0x1f8   : > { %2922 = vst.msk [vmem:[%s5291_s15 + $0x60] sm:$0xff] %vm2909_vm2, %v2889_v53  ;;  %v2965_v45 = vsel %vm2909_vm2, %v2889_v53, 0.0  ;;  %v3025_v27 = vmul.f32 %v2889_v53, %v2889_v53  ;;  %v2890_v32 = vadd.f32 %v4142_v3, %v5286_v54  ;;  %v2969_v6 = vsel %vm2909_vm2, %v2891_v61, 0.0 }
 0x1f9   : > { %v2966_v38 = vadd.f32 %v2965_v45, %v2964_v15  ;;  %2925 = vst.msk [vmem:[%s5291_s15 + $0x78] sm:$0xff] %vm2909_vm2, %v2892_v19  ;;  %v3975_v46 = vpop.f32.mrb[16].mxu1  ;;  %v3067_v48 = vadd.f32 %v3066_v33, %v3065_v26  ;;  %v3028_v13 = vmul.f32 %v2892_v19, %v2892_v19  ;;  %v2971_v47 = vsel %vm2909_vm2, %v2892_v19, 0.0 }
 0x1fa   : > { %v3068_v49 = vsel %vm2909_vm2, %v3025_v27, 0.0  ;;  %2923 = vst.msk [vmem:[%s5291_s15 + $0x68] sm:$0xff] %vm2909_vm2, %v2890_v32  ;;  %v2967_v50 = vsel %vm2909_vm2, %v2890_v32, 0.0  ;;  %v3026_v51 = vmul.f32 %v2890_v32, %v2890_v32  ;;  %v4111_v62 = vpop.f32.mrb[16].mxu0  ;;  %v1598_v63 = vpop.f32.mrb[17].mxu1  ;;  %v3072_v4 = vsel %vm2909_vm2, %v3027_v0, 0.0 }
 0x1fb   : > { %v2968_v2 = vadd.f32 %v2967_v50, %v2966_v38  ;;  %v4143_v12 = vadd.f32 %v4111_v62, %v3975_v46  ;;  %v2775_v52 = vpop.f32.mrb[17].mxu0  ;;  %v3976_v5 = vpop.f32.mrb[18].mxu1  ;;  %v3069_v7 = vadd.f32 %v3068_v49, %v3067_v48  ;;  %v3074_v23 = vsel %vm2909_vm2, %v3028_v13, 0.0 }
 0x1fc   : > { %v3070_v8 = vsel %vm2909_vm2, %v3026_v51, 0.0  ;;  %v4144_v24 = vadd.f32 %v2775_v52, %v1598_v63  ;;  %v4112_v25 = vpop.f32.mrb[18].mxu0  ;;  %v1601_v28 = vpop.f32.mrb[19].mxu1 }
 0x1fd   : > { %v2970_v31 = vadd.f32 %v2969_v6, %v2968_v2  ;;  %v2895_v43 = vadd.f32 %v4143_v12, %v5286_v54  ;;  %v4145_v44 = vadd.f32 %v4112_v25, %v3976_v5  ;;  %v2778_v14 = vpop.f32.mrb[19].mxu0  ;;  %v3071_v59 = vadd.f32 %v3070_v8, %v3069_v7 }
 0x1fe   : > { %v2893_v60 = vadd.f32 %v4144_v24, %v5286_v54  ;;  %v4146_v16 = vadd.f32 %v2778_v14, %v1601_v28 }
 0x1ff   : > { %2928 = vst.msk [vmem:[%s5291_s15 + $0x90] sm:$0xff] %vm2909_vm2, %v2895_v43  ;;  %v2972_v11 = vadd.f32 %v2971_v47, %v2970_v31  ;;  %v2896_v17 = vadd.f32 %v4145_v44, %v5286_v54  ;;  %v3073_v18 = vadd.f32 %v3072_v4, %v3071_v59  ;;  %v3031_v21 = vmul.f32 %v2895_v43, %v2895_v43 }
 0x200   : > { %2926 = vst.msk [vmem:[%s5291_s15 + $0x80] sm:$0xff] %vm2909_vm2, %v2893_v60  ;;  %v2973_v29 = vsel %vm2909_vm2, %v2893_v60, 0.0  ;;  %v3029_v20 = vmul.f32 %v2893_v60, %v2893_v60  ;;  %v2894_v22 = vadd.f32 %v4146_v16, %v5286_v54  ;;  %v2977_v1 = vsel %vm2909_vm2, %v2895_v43, 0.0 }
 0x201   : > { %v2974_v35 = vadd.f32 %v2973_v29, %v2972_v11  ;;  %2929 = vst.msk [vmem:[%s5291_s15 + $0x98] sm:$0xff] %vm2909_vm2, %v2896_v17  ;;  %v3979_v36 = vpop.f32.mrb[20].mxu1  ;;  %v3075_v37 = vadd.f32 %v3074_v23, %v3073_v18  ;;  %v3032_v34 = vmul.f32 %v2896_v17, %v2896_v17  ;;  %v2979_v27 = vsel %vm2909_vm2, %v2896_v17, 0.0 }
 0x202   : > { %v3076_v40 = vsel %vm2909_vm2, %v3029_v20, 0.0  ;;  %2927 = vst.msk [vmem:[%s5291_s15 + $0x88] sm:$0xff] %vm2909_vm2, %v2894_v22  ;;  %v2975_v41 = vsel %vm2909_vm2, %v2894_v22, 0.0  ;;  %v3030_v42 = vmul.f32 %v2894_v22, %v2894_v22  ;;  %v4115_v56 = vpop.f32.mrb[20].mxu0  ;;  %v1614_v57 = vpop.f32.mrb[21].mxu1  ;;  %v3080_v46 = vsel %vm2909_vm2, %v3031_v21, 0.0 }
 0x203   : > { %v2976_v58 = vadd.f32 %v2975_v41, %v2974_v35  ;;  %v4147_v39 = vadd.f32 %v4115_v56, %v3979_v36  ;;  %v2791_v55 = vpop.f32.mrb[21].mxu0  ;;  %v3980_v61 = vpop.f32.mrb[22].mxu1  ;;  %v3077_v9 = vadd.f32 %v3076_v40, %v3075_v37  ;;  %v3082_v0 = vsel %vm2909_vm2, %v3032_v34, 0.0 }
 0x204   : > { %v3078_v30 = vsel %vm2909_vm2, %v3030_v42, 0.0  ;;  %v4148_v10 = vadd.f32 %v2791_v55, %v1614_v57  ;;  %v4116_v53 = vpop.f32.mrb[22].mxu0  ;;  %v1617_v3 = vpop.f32.mrb[23].mxu1 }
 0x205   : > { %v2978_v15 = vadd.f32 %v2977_v1, %v2976_v58  ;;  %v2899_v19 = vadd.f32 %v4147_v39, %v5286_v54  ;;  %v4149_v26 = vadd.f32 %v4116_v53, %v3980_v61  ;;  %v2794_v45 = vpop.f32.mrb[23].mxu0  ;;  %v3079_v32 = vadd.f32 %v3078_v30, %v3077_v9 }
 0x206   : > { %v2897_v33 = vadd.f32 %v4148_v10, %v5286_v54  ;;  %v4150_v38 = vadd.f32 %v2794_v45, %v1617_v3 }
 0x207   : > { %2932 = vst.msk [vmem:[%s5291_s15 + $0xb0] sm:$0xff] %vm2909_vm2, %v2899_v19  ;;  %v2980_v48 = vadd.f32 %v2979_v27, %v2978_v15  ;;  %v2900_v49 = vadd.f32 %v4149_v26, %v5286_v54  ;;  %v3081_v50 = vadd.f32 %v3080_v46, %v3079_v32  ;;  %v3035_v25 = vmul.f32 %v2899_v19, %v2899_v19 }
 0x208   : > { %2930 = vst.msk [vmem:[%s5291_s15 + $0xa0] sm:$0xff] %vm2909_vm2, %v2897_v33  ;;  %v2981_v51 = vsel %vm2909_vm2, %v2897_v33, 0.0  ;;  %v3033_v62 = vmul.f32 %v2897_v33, %v2897_v33  ;;  %v2898_v63 = vadd.f32 %v4150_v38, %v5286_v54  ;;  %v2985_v44 = vsel %vm2909_vm2, %v2899_v19, 0.0 }
 0x209   : > { %v2982_v2 = vadd.f32 %v2981_v51, %v2980_v48  ;;  %2933 = vst.msk [vmem:[%s5291_s15 + $0xb8] sm:$0xff] %vm2909_vm2, %v2900_v49  ;;  %v3983_v12 = vpop.f32.mrb[24].mxu1  ;;  %v3083_v52 = vadd.f32 %v3082_v0, %v3081_v50  ;;  %v3036_v4 = vmul.f32 %v2900_v49, %v2900_v49  ;;  %v2987_v20 = vsel %vm2909_vm2, %v2900_v49, 0.0 }
 0x20a   : > { %v3084_v5 = vsel %vm2909_vm2, %v3033_v62, 0.0  ;;  %2931 = vst.msk [vmem:[%s5291_s15 + $0xa8] sm:$0xff] %vm2909_vm2, %v2898_v63  ;;  %v2983_v6 = vsel %vm2909_vm2, %v2898_v63, 0.0  ;;  %v3034_v7 = vmul.f32 %v2898_v63, %v2898_v63  ;;  %v4119_v8 = vpop.f32.mrb[24].mxu0  ;;  %v1630_v24 = vpop.f32.mrb[25].mxu1  ;;  %v3088_v36 = vsel %vm2909_vm2, %v3035_v25, 0.0 }
 0x20b   : > { %v2984_v28 = vadd.f32 %v2983_v6, %v2982_v2  ;;  %v4151_v13 = vadd.f32 %v4119_v8, %v3983_v12  ;;  %v2807_v31 = vpop.f32.mrb[25].mxu0  ;;  %v3984_v43 = vpop.f32.mrb[26].mxu1  ;;  %v3085_v14 = vadd.f32 %v3084_v5, %v3083_v52  ;;  %v3090_v21 = vsel %vm2909_vm2, %v3036_v4, 0.0 }
 0x20c   : > { %v3086_v47 = vsel %vm2909_vm2, %v3034_v7, 0.0  ;;  %v4152_v59 = vadd.f32 %v2807_v31, %v1630_v24  ;;  %v4120_v60 = vpop.f32.mrb[26].mxu0  ;;  %v1633_v16 = vpop.f32.mrb[27].mxu1 }
 0x20d   : > { %v2986_v11 = vadd.f32 %v2985_v44, %v2984_v28  ;;  %v2903_v17 = vadd.f32 %v4151_v13, %v5286_v54  ;;  %v4153_v18 = vadd.f32 %v4120_v60, %v3984_v43  ;;  %v2810_v29 = vpop.f32.mrb[27].mxu0  ;;  %v3087_v22 = vadd.f32 %v3086_v47, %v3085_v14 }
 0x20e   : > { %v2901_v23 = vadd.f32 %v4152_v59, %v5286_v54  ;;  %v4154_v35 = vadd.f32 %v2810_v29, %v1633_v16 }
 0x20f   : > { %2936 = vst.msk [vmem:[%s5291_s15 + $0xd0] sm:$0xff] %vm2909_vm2, %v2903_v17  ;;  %v2988_v37 = vadd.f32 %v2987_v20, %v2986_v11  ;;  %v2904_v40 = vadd.f32 %v4153_v18, %v5286_v54  ;;  %v3089_v41 = vadd.f32 %v3088_v36, %v3087_v22  ;;  %v3039_v53 = vmul.f32 %v2903_v17, %v2903_v17 }
 0x210   : > { %2934 = vst.msk [vmem:[%s5291_s15 + $0xc0] sm:$0xff] %vm2909_vm2, %v2901_v23  ;;  %v2989_v42 = vsel %vm2909_vm2, %v2901_v23, 0.0  ;;  %v3037_v56 = vmul.f32 %v2901_v23, %v2901_v23  ;;  %v2902_v57 = vadd.f32 %v4154_v35, %v5286_v54  ;;  %v2993_v26 = vsel %vm2909_vm2, %v2903_v17, 0.0 }
 0x211   : > { %v2990_v58 = vadd.f32 %v2989_v42, %v2988_v37  ;;  %2937 = vst.msk [vmem:[%s5291_s15 + $0xd8] sm:$0xff] %vm2909_vm2, %v2904_v40  ;;  %v3987_v39 = vpop.f32.mrb[28].mxu1  ;;  %v3091_v55 = vadd.f32 %v3090_v21, %v3089_v41  ;;  %v3040_v46 = vmul.f32 %v2904_v40, %v2904_v40  ;;  %v2995_v62 = vsel %vm2909_vm2, %v2904_v40, 0.0 }
 0x212   : > { %v3092_v61 = vsel %vm2909_vm2, %v3037_v56, 0.0  ;;  %2935 = vst.msk [vmem:[%s5291_s15 + $0xc8] sm:$0xff] %vm2909_vm2, %v2902_v57  ;;  %v2991_v1 = vsel %vm2909_vm2, %v2902_v57, 0.0  ;;  %v3038_v9 = vmul.f32 %v2902_v57, %v2902_v57  ;;  %v4123_v30 = vpop.f32.mrb[28].mxu0  ;;  %v1646_v10 = vpop.f32.mrb[29].mxu1  ;;  %v3096_v12 = vsel %vm2909_vm2, %v3039_v53, 0.0 }
 0x213   : > { %v2992_v3 = vadd.f32 %v2991_v1, %v2990_v58  ;;  %v4155_v34 = vadd.f32 %v4123_v30, %v3987_v39  ;;  %v2823_v15 = vpop.f32.mrb[29].mxu0  ;;  %v3988_v19 = vpop.f32.mrb[30].mxu1  ;;  %v3093_v45 = vadd.f32 %v3092_v61, %v3091_v55  ;;  %v3098_v28 = vsel %vm2909_vm2, %v3040_v46, 0.0 }
 0x214   : > { %v3094_v27 = vsel %vm2909_vm2, %v3038_v9, 0.0  ;;  %v4156_v32 = vadd.f32 %v2823_v15, %v1646_v10  ;;  %v4124_v33 = vpop.f32.mrb[30].mxu0  ;;  %v1649_v38 = vpop.f32.mrb[31].mxu1 }
 0x215   : > { %v2994_v48 = vadd.f32 %v2993_v26, %v2992_v3  ;;  %v2907_v49 = vadd.f32 %v4155_v34, %v5286_v54  ;;  %v4157_v50 = vadd.f32 %v4124_v33, %v3988_v19  ;;  %v2826_v51 = vpop.f32.mrb[31].mxu0  ;;  %v3095_v63 = vadd.f32 %v3094_v27, %v3093_v45 }
 0x216   : > { %v2905_v0 = vadd.f32 %v4156_v32, %v5286_v54  ;;  %v4158_v2 = vadd.f32 %v2826_v51, %v1649_v38 }
 0x217   : > { %2940 = vst.msk [vmem:[%s5291_s15 + $0xf0] sm:$0xff] %vm2909_vm2, %v2907_v49  ;;  %v3043_v52 = vmul.f32 %v2907_v49, %v2907_v49  ;;  %v2996_v5 = vadd.f32 %v2995_v62, %v2994_v48  ;;  %v2908_v6 = vadd.f32 %v4157_v50, %v5286_v54  ;;  %v3097_v7 = vadd.f32 %v3096_v12, %v3095_v63 }
 0x218   : > { %2938 = vst.msk [vmem:[%s5291_s15 + $0xe0] sm:$0xff] %vm2909_vm2, %v2905_v0  ;;  %v2997_v8 = vsel %vm2909_vm2, %v2905_v0, 0.0  ;;  %v3041_v24 = vmul.f32 %v2905_v0, %v2905_v0  ;;  %v2906_v25 = vadd.f32 %v4158_v2, %v5286_v54  ;;  %v3001_v16 = vsel %vm2909_vm2, %v2907_v49, 0.0 }
 0x219   : > { %v3104_v13 = vsel %vm2909_vm2, %v3043_v52, 0.0  ;;  %v2998_v31 = vadd.f32 %v2997_v8, %v2996_v5  ;;  %2941 = vst.msk [vmem:[%s5291_s15 + $0xf8] sm:$0xff] %vm2909_vm2, %v2908_v6  ;;  %v3044_v43 = vmul.f32 %v2908_v6, %v2908_v6  ;;  %v3099_v44 = vadd.f32 %v3098_v28, %v3097_v7 }
 0x21a   : > { %v3100_v14 = vsel %vm2909_vm2, %v3041_v24, 0.0  ;;  %2939 = vst.msk [vmem:[%s5291_s15 + $0xe8] sm:$0xff] %vm2909_vm2, %v2906_v25  ;;  %v2999_v47 = vsel %vm2909_vm2, %v2906_v25, 0.0  ;;  %v3042_v59 = vmul.f32 %v2906_v25, %v2906_v25  ;;  %v3003_v18 = vsel %vm2909_vm2, %v2908_v6, 0.0  ;;  %s5481_s15 = scalar_lea.hbm %s5565_s5, %s3662_s16 }
 0x21b   : > { %v3106_v54 = vsel %vm2909_vm2, %v3044_v43, 0.0  ;;  %v3000_v60 = vadd.f32 %v2999_v47, %v2998_v31  ;;  %v3101_v4 = vadd.f32 %v3100_v14, %v3099_v44 }
 0x21c   : > { %v3102_v11 = vsel %vm2909_vm2, %v3042_v59, 0.0 }
 0x21d   : > { %v3002_v17 = vadd.f32 %v3001_v16, %v3000_v60  ;;  %v3103_v29 = vadd.f32 %v3102_v11, %v3101_v4 }
 0x21f   : > { %v3004_v20 = vadd.f32 %v3003_v18, %v3002_v17  ;;  %v3105_v22 = vadd.f32 %v3104_v13, %v3103_v29 }
 0x221   : > { %v3005_v23 = vrot.slane %v3004_v20, 4  ;;  %v3107_v35 = vadd.f32 %v3106_v54, %v3105_v22 }
 0x223   : > { %v3006_v36 = vadd.f32 %v3005_v23, %v3004_v20  ;;  %v3108_v37 = vrot.slane %v3107_v35, 4 }
 0x225   : > { %v3007_v40 = vrot.slane %v3006_v36, 2  ;;  %v3109_v41 = vadd.f32 %v3108_v37, %v3107_v35 }
 0x227   : > { %v3008_v42 = vadd.f32 %v3007_v40, %v3006_v36  ;;  %v3110_v56 = vrot.slane %v3109_v41, 2 }
 0x229   : > { %v3009_v57 = vrot.slane %v3008_v42, 1  ;;  %v3111_v21 = vadd.f32 %v3110_v56, %v3109_v41 }
 0x22b   : > { %v3010_v58 = vadd.f32 %v3009_v57, %v3008_v42  ;;  %v3112_v39 = vrot.slane %v3111_v21, 1 }
 0x22d   : > { %3012 = vst.msk [vmem:[%s259_s27] sm:$0x1] %vm3011_vm3, %v3010_v58 }
 0x22e   : > { %4487 = shalt.err (!%p4484_p7)
}
 0x22f   : > { %s4488_s16 = scalar_lea.hbm %s5473_s13, 16  ;;  %s4492_s14 = scalar_lea.hbm %s5564_s4, 96 }
 0x230   : > { %p4489_p9 = scmp.ne.s32.totalorder %s5473_s13, %s4488_s16  ;;  %p4493_p12 = scmp.lt.u32.totalorder %s5473_s13, %s5564_s4 }
 0x231   : > { %p4494_p13 = scmp.lt.u32.totalorder %s4492_s14, %s4488_s16  ;;  %p4496_p1 = scmp.lt.u32.totalorder %s4488_s16, %s5473_s13 }
 0x232   : > { %p4490_p10 = pnand %p4489_p9, %p4685_p3 }
 0x233   : > { %p4495_p0 = por %p4494_p13, %p4493_p12 }
 0x234   : > { %p4491_p11 = pneg %p4490_p10 }
 0x235   : > { %p4497_p2 = por %p4496_p1, %p4495_p0 }
 0x237   : > { %p4498_p4 = pnand %p4497_p2, %p4491_p11 }
 0x239   : > { %4501 = shalt.err (!%p4498_p4)
}
 0x23a   : > { %4398 = dma.vmem_to_hbm [thread:$0]  (%p4685_p3), %s5475_s30, 16, %s5473_s13, %s3125_s26   ;;  %v3113_v55 = vadd.f32 %v3112_v39, %v3111_v21 }
 0x23b   : > { %s5569_s22 = scalar_lea.vmem [#allocation4], %s5463_s8  ;;  %s3129_s17 = scalar_lea.sflag [#allocation5], %s5463_s8 }
 0x23c   : > { %3114 = vst.msk [vmem:[%s5569_s22] sm:$0x1] %vm3011_vm3, %v3113_v55  ;;  %s4502_s16 = scalar_lea.vmem %s5483_s9, 16  ;;  %s4603_s27 = smov [#allocation4]  }
 0x23d   : > { %p4503_p5 = scmp.ne.s32.totalorder %s5483_s9, %s4502_s16  ;;  %s4506_s21 = sshll.u32 %s4603_s27, 4  ;;  %s4507_s21 = int_to_ptr.vmem [resolvable:$false] %s4506_s21 }
 0x23e   : > { %s4508_s14 = scalar_lea.vmem %s4507_s21, 32  ;;  %p4509_p9 = scmp.lt.s32.totalorder %s5483_s9, %s4507_s21 }
 0x23f   : > { %p4504_p6 = pnand %p4503_p5, %p4685_p3  ;;  %p4510_p10 = scmp.lt.s32.totalorder %s4508_s14, %s4502_s16 }
 0x241   : > { %p4505_p7 = pneg %p4504_p6  ;;  %p4511_p11 = por %p4510_p10, %p4509_p9 }
 0x243   : > { %p4512_p12 = pnand %p4511_p11, %p4505_p7 }
 0x245   : > { %4515 = shalt.err (!%p4512_p12)
}
 0x246   : > { %s4516_s8 = scalar_lea.hbm %s5481_s15, 16  ;;  %s4520_s26 = scalar_lea.hbm %s5565_s5, 96 }
 0x247   : > { %p4517_p13 = scmp.ne.s32.totalorder %s5481_s15, %s4516_s8  ;;  %p4521_p2 = scmp.lt.u32.totalorder %s5481_s15, %s5565_s5 }
 0x248   : > { %p4522_p4 = scmp.lt.u32.totalorder %s4520_s26, %s4516_s8  ;;  %p4524_p6 = scmp.lt.u32.totalorder %s4516_s8, %s5481_s15 }
 0x249   : > { %p4518_p0 = pnand %p4517_p13, %p4685_p3 }
 0x24a   : > { %p4523_p5 = por %p4522_p4, %p4521_p2 }
 0x24b   : > { %p4519_p1 = pneg %p4518_p0 }
 0x24c   : > { %p4525_p7 = por %p4524_p6, %p4523_p5 }
 0x24e   : > { %p4526_p9 = pnand %p4525_p7, %p4519_p1 }
 0x250   : > { %4529 = shalt.err (!%p4526_p9)
}
 0x251   : > { %4399 = dma.vmem_to_hbm [thread:$0]  (%p4685_p3), %s5483_s9, 16, %s5481_s15, %s3129_s17  }
 0x252 PF: > { %p4409_p10 = scmp.ge.s32.totalorder %s4600_s25, 2  ;;  %s3185_s22 = sand.u32 1, %s4572_s18  }
 0x253   : > { %s3186_s16 = scalar_lea.sflag [#allocation3], %s3185_s22 }
 0x254   : > { %p4403_p11 = pnand %p4409_p10, %p4694_p8 }
 0x256   : > { %4563 = dma.done.wait (!%p4403_p11), %s3186_s16, 16  }
 0x257   : > { %4565 = vsyncadd (!%p4403_p11), %s3186_s16, 4294967280  ;;  %s3194_s27 = scalar_lea.sflag [#allocation5], %s3185_s22 }
 0x258   : > { %4567 = dma.done.wait (!%p4403_p11), %s3194_s27, 16  }
 0x259   : > { %4569 = vsyncadd (!%p4403_p11), %s3194_s27, 4294967280  ;;  %s22_s25 = sadd.s32 1, %s4600_s25   ;;  %s5570_s18 = smov %s4576_s19 }
 0x25a   : > { %p19_p12 = scmp.ge.s32.totalorder %s22_s25, 8   ;;  %s5571_s19 = smov %s4580_s20 }
 0x25b   : > { %s5572_s20 = smov %s4703_s11  ;;  %s5573_s21 = smov %s4592_s23 }
 0x25c   : > { %s5574_s22 = smov %s4596_s24  ;;  %s5575_s23 = smov %s5578_s28 }
 0x25d   : > { %s5576_s24 = smov %s5582_s29  ;;  %21 = sbr.rel (!%p19_p12) target bundleno = 7 (0x7), region = 106 }
 0x264   :  { %3198 = vsyncpa [#allocation3], 1 }
 0x265   :  { %3200 = vsyncpa [#allocation3 + $0x1], 1 }
 0x266   :  { %3201 = vsyncpa [#allocation5], 1 }
 0x267   :  { %3203 = vsyncpa [#allocation5 + $0x1], 1 }

</bundles_post_ra>
